<compile_context>
chip_gen: v6e
topology: v6e:2x2x1
jax: 0.10.0
libtpu: 0.0.40
codegen_flags: <defaults>
</compile_context>

<pallas_src>
import functools
import math

import jax
import jax.numpy as jnp
from jax.experimental import pallas as pl
from jax.experimental.pallas import tpu as pltpu

_VMEM = pl.BlockSpec(memory_space=pltpu.MemorySpace.VMEM)


# ----------------------------------------------------------------------------
# Fused forward kernel
# ----------------------------------------------------------------------------
def _fused_kernel(x_ref, mask_ref, w1_ref, b1_ref,
                  w2q_ref, b2q_ref, w2k_ref, b2k_ref, w2v_ref, b2v_ref,
                  w3_ref, b3_ref, o_ref, *, B, R, Dh):
    """Whole forward pass in a single grid-less invocation (all data in VMEM)."""

    def mm(x, w_ref, b_ref):
        # Weights are pre-packed as (in, out): contract x dim 1 with w dim 0,
        # i.e. native MXU (K, N) order, f32 accumulation.
        return jax.lax.dot_general(
            x, w_ref[...],
            dimension_numbers=(((1,), (0,)), ((), ())),
            preferred_element_type=jnp.float32) + b_ref[...]

    # 1) all per-feature input projections: ONE block-diagonal matmul
    proj = mm(x_ref[...], w1_ref, b1_ref)                       # (R, n*E)

    # 2) Q / K / V for every (pair, head): three lane-dense matmuls; output
    #    columns are ordered (pair, head, dh) and the pair -> feature selection
    #    plus the 1/sqrt(Dh) query scale are baked into the packed weights.
    q_flat = mm(proj, w2q_ref, b2q_ref)                         # (R, B*Dh)
    k_flat = mm(proj, w2k_ref, b2k_ref)                         # (R, B*Dh)
    v_flat = mm(proj, w2v_ref, b2v_ref)                         # (R, B*Dh)

    # 3) build the (pair*head)-batched stacks once by static slicing
    def stack(flat):
        return jnp.stack([flat[:, b * Dh:(b + 1) * Dh] for b in range(B)],
                         axis=0)                                # (B, R, Dh)

    q_s, k_s, v_s = stack(q_flat), stack(k_flat), stack(v_flat)

    # 4) ONE batched score matmul over all (pair, head) items; the torch batch
    #    dim (folded into rows) is restored with an additive block-diag mask.
    s = jax.lax.dot_general(
        q_s, k_s, dimension_numbers=(((2,), (2,)), ((0,), (0,))),
        preferred_element_type=jnp.float32)                     # (B, R, R)
    s = s + mask_ref[...][None, :, :]

    # 5) ONE softmax (exact normalization — no approximate reciprocal)
    s = s - jnp.max(s, axis=-1, keepdims=True)
    e = jnp.exp(s)
    p = e / jnp.sum(e, axis=-1, keepdims=True)

    # 6) ONE batched P @ V matmul
    o = jax.lax.dot_general(
        p, v_s, dimension_numbers=(((2,), (1,)), ((0,), (0,))),
        preferred_element_type=jnp.float32)                     # (B, R, Dh)

    # 7) out-projection fused with the per-pair lane packing: one
    #    (R, P*E) @ kron(I_P, Wo^T) matmul written straight to the output slab.
    # TODO(synk): attention-weight dropout (p=0.1) omitted — eval-mode semantics.
    attn = jnp.concatenate([o[b] for b in range(B)], axis=-1)   # (R, B*Dh)
    o_ref[...] = mm(attn, w3_ref, b3_ref)                       # (R, P*E)


# ----------------------------------------------------------------------------
# Wrapper: torch-layout (L, N, *) in / out, single pallas_call
# ----------------------------------------------------------------------------
def cross_attention_feature_fusion(features, params, num_heads):
    n = len(features)
    L, N, _ = features[0].shape
    E = params["out_w"].shape[0]
    H = num_heads
    Dh = E // H
    R = N * L                                   # rows, batch-major: r = nb*L + l
    pairs = tuple((i, j) for i in range(n) for j in range(n) if i != j)
    P = len(pairs)
    B = P * H
    f32 = jnp.float32

    # ---- activations: batch-major rows, all features lane-concatenated once
    d_dims = [int(f.shape[-1]) for f in features]
    x_cat = jnp.concatenate(
        [jnp.transpose(f, (1, 0, 2)).reshape(R, d) for f, d in zip(features, d_dims)],
        axis=-1)                                               # (R, sum(d_dims))

    # ---- W1 / b1: block-diagonal packing of the per-feature nn.Linear's
    D_total = sum(d_dims)
    W1 = jnp.zeros((D_total, n * E), f32)
    off = 0
    for i, d in enumerate(d_dims):
        W1 = W1.at[off:off + d, i * E:(i + 1) * E].set(params["proj_w"][i].T)
        off += d
    b1 = jnp.concatenate([params["proj_b"][i] for i in range(n)]).reshape(1, n * E)

    # ---- W2{q,k,v}: per-(pair, head) QKV projections, feature selection and
    #      query scale baked in; columns ordered (pair, head, dh) head-major.
    in_w, in_b = params["in_proj_w"], params["in_proj_b"]
    wq, wk, wv = in_w[:E], in_w[E:2 * E], in_w[2 * E:]
    bq, bk, bv = in_b[:E], in_b[E:2 * E], in_b[2 * E:]
    scale = 1.0 / math.sqrt(Dh)

    def pack_qkv(w, b, feat_ids, s):
        W = jnp.zeros((n * E, P * E), f32)
        for p, fid in enumerate(feat_ids):
            W = W.at[fid * E:(fid + 1) * E, p * E:(p + 1) * E].set(w.T * s)
        bb = jnp.tile(b * s, P).reshape(1, P * E)
        return W, bb

    W2q, b2q = pack_qkv(wq, bq, [i for i, _ in pairs], scale)
    W2k, b2k = pack_qkv(wk, bk, [j for _, j in pairs], 1.0)
    W2v, b2v = pack_qkv(wv, bv, [j for _, j in pairs], 1.0)

    # ---- W3 / b3: out-projection for all pairs fused with the lane packing
    W3 = jnp.kron(jnp.eye(P, dtype=f32), params["out_w"].T.astype(f32))
    b3 = jnp.tile(params["out_b"], P).reshape(1, P * E)

    # ---- additive block-diagonal mask restoring the folded batch dim
    rb = jnp.arange(R) // L
    mask = jnp.where(rb[:, None] == rb[None, :], 0.0, -1e9).astype(f32)

    kernel = functools.partial(_fused_kernel, B=B, R=R, Dh=Dh)
    args = (x_cat, mask, W1, b1, W2q, b2q, W2k, b2k, W2v, b2v, W3, b3)

    out = pl.pallas_call(
        kernel,
        out_shape=jax.ShapeDtypeStruct((R, P * E), f32),
        in_specs=[_VMEM] * len(args),
        out_specs=_VMEM,
    )(*args)

    # (N*L, P*E) -> (L, N, P*E) torch layout
    return jnp.transpose(out.reshape(N, L, P * E), (1, 0, 2))


# ----------------------------------------------------------------------------
# Pure-JAX reference (full f32 precision, for correctness checking)
# ----------------------------------------------------------------------------
def _reference(features, params, num_heads):
    E = params["out_w"].shape[0]
    hi = jax.lax.Precision.HIGHEST
    wq, wk, wv = (params["in_proj_w"][:E], params["in_proj_w"][E:2 * E],
                  params["in_proj_w"][2 * E:])
    bq, bk, bv = (params["in_proj_b"][:E], params["in_proj_b"][E:2 * E],
                  params["in_proj_b"][2 * E:])

    def lin(x, w, b):
        return jnp.einsum("lnd,pd->lnp", x, w, precision=hi) + b

    proj = [lin(features[i], params["proj_w"][i], params["proj_b"][i])
            for i in range(len(features))]

    def mha_ref(q, kv):
        L, N, _ = q.shape
        M = kv.shape[0]
        Dh = E // num_heads
        qp = jnp.einsum("lne,fe->lnf", q, wq, precision=hi) + bq
        kp = jnp.einsum("lne,fe->lnf", kv, wk, precision=hi) + bk
        vp = jnp.einsum("lne,fe->lnf", kv, wv, precision=hi) + bv
        qh = qp.reshape(L, N, num_heads, Dh).transpose(1, 2, 0, 3) * (1.0 / (Dh ** 0.5))
        kh = kp.reshape(M, N, num_heads, Dh).transpose(1, 2, 0, 3)
        vh = vp.reshape(M, N, num_heads, Dh).transpose(1, 2, 0, 3)
        s = jnp.einsum("nhld,nhmd->nhlm", qh, kh, precision=hi)
        p = jax.nn.softmax(s, axis=-1)
        o = jnp.einsum("nhlm,nhmd->nhld", p, vh, precision=hi)
        o = o.transpose(2, 0, 1, 3).reshape(L, N, E)
        return jnp.einsum("lne,fe->lnf", o, params["out_w"], precision=hi) + params["out_b"]

    outs = []
    n = len(features)
    for i in range(n):
        for j in range(n):
            if i != j:
                outs.append(mha_ref(proj[i], proj[j]))
    return jnp.concatenate(outs, axis=-1)


# ----------------------------------------------------------------------------
if __name__ == "__main__":
    # Module config (matches __init__ shapes): proj_dim=32, num_heads=2
    feature_num = 3
    proj_dim = 32
    num_heads = 2
    seq_len = 8
    batch = 2
    feat_dims = [16, 24, 40]

    key = jax.random.PRNGKey(0)
    keys = jax.random.split(key, 4 + 2 * feature_num)
    kidx = iter(range(len(keys)))

    # Deterministic synthetic parameters (shapes follow nn.Linear /
    # nn.MultiheadAttention internals: in_proj (3E,E)+(3E,), out_proj (E,E)+(E,)).
    proj_w = [0.1 * jax.random.normal(keys[next(kidx)], (proj_dim, d), jnp.float32)
              for d in feat_dims]
    proj_b = [0.1 * jax.random.normal(keys[next(kidx)], (proj_dim,), jnp.float32)
              for _ in feat_dims]
    in_proj_w = 0.1 * jax.random.normal(keys[next(kidx)], (3 * proj_dim, proj_dim), jnp.float32)
    in_proj_b = 0.1 * jax.random.normal(keys[next(kidx)], (3 * proj_dim,), jnp.float32)
    out_proj_w = 0.1 * jax.random.normal(keys[next(kidx)], (proj_dim, proj_dim), jnp.float32)
    out_proj_b = 0.1 * jax.random.normal(keys[next(kidx)], (proj_dim,), jnp.float32)

    params = {
        "proj_w": proj_w,
        "proj_b": proj_b,
        "in_proj_w": in_proj_w,
        "in_proj_b": in_proj_b,
        "out_w": out_proj_w,
        "out_b": out_proj_b,
    }

    # Inputs: list of (seq_len, batch, feature_dim) tensors (torch layout).
    feat_keys = jax.random.split(jax.random.PRNGKey(0), feature_num)
    features = [jax.random.normal(feat_keys[i], (seq_len, batch, feat_dims[i]), jnp.float32)
                for i in range(feature_num)]

    out = cross_attention_feature_fusion(features, params, num_heads)
    out = jax.block_until_ready(out)

    expected_last = proj_dim * feature_num * (feature_num - 1)
    assert out.shape == (seq_len, batch, expected_last), out.shape

    ref = jax.block_until_ready(_reference(features, params, num_heads))
    # Exact in-kernel softmax + full-precision (HIGHEST) reference matmuls:
    # agreement is ~1e-6; 2e-4 leaves ample margin for f32 MXU pass ordering.
    err = float(jnp.max(jnp.abs(out - ref)))
    assert jnp.allclose(out, ref, atol=2e-4, rtol=2e-4), err

    print("KERNEL_OK")
</pallas_src>

<mosaic_0001>
module attributes {stable_mosaic.version = 11 : i64} {
  func.func @_fused_kernel(%arg0: memref<16x80xf32, #tpu.memory_space<vmem>>, %arg1: memref<16x16xf32, #tpu.memory_space<vmem>>, %arg2: memref<80x96xf32, #tpu.memory_space<vmem>>, %arg3: memref<1x96xf32, #tpu.memory_space<vmem>>, %arg4: memref<96x192xf32, #tpu.memory_space<vmem>>, %arg5: memref<1x192xf32, #tpu.memory_space<vmem>>, %arg6: memref<96x192xf32, #tpu.memory_space<vmem>>, %arg7: memref<1x192xf32, #tpu.memory_space<vmem>>, %arg8: memref<96x192xf32, #tpu.memory_space<vmem>>, %arg9: memref<1x192xf32, #tpu.memory_space<vmem>>, %arg10: memref<192x192xf32, #tpu.memory_space<vmem>>, %arg11: memref<1x192xf32, #tpu.memory_space<vmem>>, %arg12: memref<16x192xf32, #tpu.memory_space<vmem>>) attributes {dimension_semantics = [], scalar_prefetch = 0 : i64, scratch_operands = 0 : i64, tpu.core_type = #tpu.core_type<tc>} {
    %c0 = arith.constant 0 : index
    %c0_0 = arith.constant 0 : index
    %0 = vector.load %arg0[%c0, %c0_0] : memref<16x80xf32, #tpu.memory_space<vmem>>, vector<16x80xf32>
    %c0_1 = arith.constant 0 : index
    %c0_2 = arith.constant 0 : index
    %1 = vector.load %arg2[%c0_1, %c0_2] : memref<80x96xf32, #tpu.memory_space<vmem>>, vector<80x96xf32>
    %cst = arith.constant dense<0.000000e+00> : vector<16x96xf32>
    %2 = tpu.matmul %0, %1, %cst {dimension_numbers = #tpu.dot_dimension_numbers<[1], [0], [0], [1], [0, 0, 1, 1], [], []>} : vector<16x80xf32>, vector<80x96xf32>, vector<16x96xf32> -> vector<16x96xf32>
    %c0_3 = arith.constant 0 : index
    %c0_4 = arith.constant 0 : index
    %3 = vector.load %arg3[%c0_3, %c0_4] : memref<1x96xf32, #tpu.memory_space<vmem>>, vector<1x96xf32>
    %4 = vector.broadcast %3 : vector<1x96xf32> to vector<16x96xf32>
    %5 = arith.addf %2, %4 : vector<16x96xf32>
    %c0_5 = arith.constant 0 : index
    %c0_6 = arith.constant 0 : index
    %6 = vector.load %arg4[%c0_5, %c0_6] : memref<96x192xf32, #tpu.memory_space<vmem>>, vector<96x192xf32>
    %cst_7 = arith.constant dense<0.000000e+00> : vector<16x192xf32>
    %7 = tpu.matmul %5, %6, %cst_7 {dimension_numbers = #tpu.dot_dimension_numbers<[1], [0], [0], [1], [0, 0, 1, 1], [], []>} : vector<16x96xf32>, vector<96x192xf32>, vector<16x192xf32> -> vector<16x192xf32>
    %c0_8 = arith.constant 0 : index
    %c0_9 = arith.constant 0 : index
    %8 = vector.load %arg5[%c0_8, %c0_9] : memref<1x192xf32, #tpu.memory_space<vmem>>, vector<1x192xf32>
    %9 = vector.broadcast %8 : vector<1x192xf32> to vector<16x192xf32>
    %10 = arith.addf %7, %9 : vector<16x192xf32>
    %c0_10 = arith.constant 0 : index
    %c0_11 = arith.constant 0 : index
    %11 = vector.load %arg6[%c0_10, %c0_11] : memref<96x192xf32, #tpu.memory_space<vmem>>, vector<96x192xf32>
    %cst_12 = arith.constant dense<0.000000e+00> : vector<16x192xf32>
    %12 = tpu.matmul %5, %11, %cst_12 {dimension_numbers = #tpu.dot_dimension_numbers<[1], [0], [0], [1], [0, 0, 1, 1], [], []>} : vector<16x96xf32>, vector<96x192xf32>, vector<16x192xf32> -> vector<16x192xf32>
    %c0_13 = arith.constant 0 : index
    %c0_14 = arith.constant 0 : index
    %13 = vector.load %arg7[%c0_13, %c0_14] : memref<1x192xf32, #tpu.memory_space<vmem>>, vector<1x192xf32>
    %14 = vector.broadcast %13 : vector<1x192xf32> to vector<16x192xf32>
    %15 = arith.addf %12, %14 : vector<16x192xf32>
    %c0_15 = arith.constant 0 : index
    %c0_16 = arith.constant 0 : index
    %16 = vector.load %arg8[%c0_15, %c0_16] : memref<96x192xf32, #tpu.memory_space<vmem>>, vector<96x192xf32>
    %cst_17 = arith.constant dense<0.000000e+00> : vector<16x192xf32>
    %17 = tpu.matmul %5, %16, %cst_17 {dimension_numbers = #tpu.dot_dimension_numbers<[1], [0], [0], [1], [0, 0, 1, 1], [], []>} : vector<16x96xf32>, vector<96x192xf32>, vector<16x192xf32> -> vector<16x192xf32>
    %c0_18 = arith.constant 0 : index
    %c0_19 = arith.constant 0 : index
    %18 = vector.load %arg9[%c0_18, %c0_19] : memref<1x192xf32, #tpu.memory_space<vmem>>, vector<1x192xf32>
    %19 = vector.broadcast %18 : vector<1x192xf32> to vector<16x192xf32>
    %20 = arith.addf %17, %19 : vector<16x192xf32>
    %21 = vector.extract_strided_slice %10 {offsets = [0, 0], sizes = [16, 16], strides = [1, 1]} : vector<16x192xf32> to vector<16x16xf32>
    %22 = vector.extract_strided_slice %10 {offsets = [0, 16], sizes = [16, 16], strides = [1, 1]} : vector<16x192xf32> to vector<16x16xf32>
    %23 = vector.extract_strided_slice %10 {offsets = [0, 32], sizes = [16, 16], strides = [1, 1]} : vector<16x192xf32> to vector<16x16xf32>
    %24 = vector.extract_strided_slice %10 {offsets = [0, 48], sizes = [16, 16], strides = [1, 1]} : vector<16x192xf32> to vector<16x16xf32>
    %25 = vector.extract_strided_slice %10 {offsets = [0, 64], sizes = [16, 16], strides = [1, 1]} : vector<16x192xf32> to vector<16x16xf32>
    %26 = vector.extract_strided_slice %10 {offsets = [0, 80], sizes = [16, 16], strides = [1, 1]} : vector<16x192xf32> to vector<16x16xf32>
    %27 = vector.extract_strided_slice %10 {offsets = [0, 96], sizes = [16, 16], strides = [1, 1]} : vector<16x192xf32> to vector<16x16xf32>
    %28 = vector.extract_strided_slice %10 {offsets = [0, 112], sizes = [16, 16], strides = [1, 1]} : vector<16x192xf32> to vector<16x16xf32>
    %29 = vector.extract_strided_slice %10 {offsets = [0, 128], sizes = [16, 16], strides = [1, 1]} : vector<16x192xf32> to vector<16x16xf32>
    %30 = vector.extract_strided_slice %10 {offsets = [0, 144], sizes = [16, 16], strides = [1, 1]} : vector<16x192xf32> to vector<16x16xf32>
    %31 = vector.extract_strided_slice %10 {offsets = [0, 160], sizes = [16, 16], strides = [1, 1]} : vector<16x192xf32> to vector<16x16xf32>
    %32 = vector.extract_strided_slice %10 {offsets = [0, 176], sizes = [16, 16], strides = [1, 1]} : vector<16x192xf32> to vector<16x16xf32>
    %33 = vector.shape_cast %21 : vector<16x16xf32> to vector<1x16x16xf32>
    %34 = vector.shape_cast %22 : vector<16x16xf32> to vector<1x16x16xf32>
    %35 = vector.shape_cast %23 : vector<16x16xf32> to vector<1x16x16xf32>
    %36 = vector.shape_cast %24 : vector<16x16xf32> to vector<1x16x16xf32>
    %37 = vector.shape_cast %25 : vector<16x16xf32> to vector<1x16x16xf32>
    %38 = vector.shape_cast %26 : vector<16x16xf32> to vector<1x16x16xf32>
    %39 = vector.shape_cast %27 : vector<16x16xf32> to vector<1x16x16xf32>
    %40 = vector.shape_cast %28 : vector<16x16xf32> to vector<1x16x16xf32>
    %41 = vector.shape_cast %29 : vector<16x16xf32> to vector<1x16x16xf32>
    %42 = vector.shape_cast %30 : vector<16x16xf32> to vector<1x16x16xf32>
    %43 = vector.shape_cast %31 : vector<16x16xf32> to vector<1x16x16xf32>
    %44 = vector.shape_cast %32 : vector<16x16xf32> to vector<1x16x16xf32>
    %45 = tpu.concatenate %33, %34, %35, %36, %37, %38, %39, %40, %41, %42, %43, %44 in 0 : vector<1x16x16xf32>, vector<1x16x16xf32>, vector<1x16x16xf32>, vector<1x16x16xf32>, vector<1x16x16xf32>, vector<1x16x16xf32>, vector<1x16x16xf32>, vector<1x16x16xf32>, vector<1x16x16xf32>, vector<1x16x16xf32>, vector<1x16x16xf32>, vector<1x16x16xf32> -> vector<12x16x16xf32>
    %46 = vector.extract_strided_slice %15 {offsets = [0, 0], sizes = [16, 16], strides = [1, 1]} : vector<16x192xf32> to vector<16x16xf32>
    %47 = vector.extract_strided_slice %15 {offsets = [0, 16], sizes = [16, 16], strides = [1, 1]} : vector<16x192xf32> to vector<16x16xf32>
    %48 = vector.extract_strided_slice %15 {offsets = [0, 32], sizes = [16, 16], strides = [1, 1]} : vector<16x192xf32> to vector<16x16xf32>
    %49 = vector.extract_strided_slice %15 {offsets = [0, 48], sizes = [16, 16], strides = [1, 1]} : vector<16x192xf32> to vector<16x16xf32>
    %50 = vector.extract_strided_slice %15 {offsets = [0, 64], sizes = [16, 16], strides = [1, 1]} : vector<16x192xf32> to vector<16x16xf32>
    %51 = vector.extract_strided_slice %15 {offsets = [0, 80], sizes = [16, 16], strides = [1, 1]} : vector<16x192xf32> to vector<16x16xf32>
    %52 = vector.extract_strided_slice %15 {offsets = [0, 96], sizes = [16, 16], strides = [1, 1]} : vector<16x192xf32> to vector<16x16xf32>
    %53 = vector.extract_strided_slice %15 {offsets = [0, 112], sizes = [16, 16], strides = [1, 1]} : vector<16x192xf32> to vector<16x16xf32>
    %54 = vector.extract_strided_slice %15 {offsets = [0, 128], sizes = [16, 16], strides = [1, 1]} : vector<16x192xf32> to vector<16x16xf32>
    %55 = vector.extract_strided_slice %15 {offsets = [0, 144], sizes = [16, 16], strides = [1, 1]} : vector<16x192xf32> to vector<16x16xf32>
    %56 = vector.extract_strided_slice %15 {offsets = [0, 160], sizes = [16, 16], strides = [1, 1]} : vector<16x192xf32> to vector<16x16xf32>
    %57 = vector.extract_strided_slice %15 {offsets = [0, 176], sizes = [16, 16], strides = [1, 1]} : vector<16x192xf32> to vector<16x16xf32>
    %58 = vector.shape_cast %46 : vector<16x16xf32> to vector<1x16x16xf32>
    %59 = vector.shape_cast %47 : vector<16x16xf32> to vector<1x16x16xf32>
    %60 = vector.shape_cast %48 : vector<16x16xf32> to vector<1x16x16xf32>
    %61 = vector.shape_cast %49 : vector<16x16xf32> to vector<1x16x16xf32>
    %62 = vector.shape_cast %50 : vector<16x16xf32> to vector<1x16x16xf32>
    %63 = vector.shape_cast %51 : vector<16x16xf32> to vector<1x16x16xf32>
    %64 = vector.shape_cast %52 : vector<16x16xf32> to vector<1x16x16xf32>
    %65 = vector.shape_cast %53 : vector<16x16xf32> to vector<1x16x16xf32>
    %66 = vector.shape_cast %54 : vector<16x16xf32> to vector<1x16x16xf32>
    %67 = vector.shape_cast %55 : vector<16x16xf32> to vector<1x16x16xf32>
    %68 = vector.shape_cast %56 : vector<16x16xf32> to vector<1x16x16xf32>
    %69 = vector.shape_cast %57 : vector<16x16xf32> to vector<1x16x16xf32>
    %70 = tpu.concatenate %58, %59, %60, %61, %62, %63, %64, %65, %66, %67, %68, %69 in 0 : vector<1x16x16xf32>, vector<1x16x16xf32>, vector<1x16x16xf32>, vector<1x16x16xf32>, vector<1x16x16xf32>, vector<1x16x16xf32>, vector<1x16x16xf32>, vector<1x16x16xf32>, vector<1x16x16xf32>, vector<1x16x16xf32>, vector<1x16x16xf32>, vector<1x16x16xf32> -> vector<12x16x16xf32>
    %71 = vector.extract_strided_slice %20 {offsets = [0, 0], sizes = [16, 16], strides = [1, 1]} : vector<16x192xf32> to vector<16x16xf32>
    %72 = vector.extract_strided_slice %20 {offsets = [0, 16], sizes = [16, 16], strides = [1, 1]} : vector<16x192xf32> to vector<16x16xf32>
    %73 = vector.extract_strided_slice %20 {offsets = [0, 32], sizes = [16, 16], strides = [1, 1]} : vector<16x192xf32> to vector<16x16xf32>
    %74 = vector.extract_strided_slice %20 {offsets = [0, 48], sizes = [16, 16], strides = [1, 1]} : vector<16x192xf32> to vector<16x16xf32>
    %75 = vector.extract_strided_slice %20 {offsets = [0, 64], sizes = [16, 16], strides = [1, 1]} : vector<16x192xf32> to vector<16x16xf32>
    %76 = vector.extract_strided_slice %20 {offsets = [0, 80], sizes = [16, 16], strides = [1, 1]} : vector<16x192xf32> to vector<16x16xf32>
    %77 = vector.extract_strided_slice %20 {offsets = [0, 96], sizes = [16, 16], strides = [1, 1]} : vector<16x192xf32> to vector<16x16xf32>
    %78 = vector.extract_strided_slice %20 {offsets = [0, 112], sizes = [16, 16], strides = [1, 1]} : vector<16x192xf32> to vector<16x16xf32>
    %79 = vector.extract_strided_slice %20 {offsets = [0, 128], sizes = [16, 16], strides = [1, 1]} : vector<16x192xf32> to vector<16x16xf32>
    %80 = vector.extract_strided_slice %20 {offsets = [0, 144], sizes = [16, 16], strides = [1, 1]} : vector<16x192xf32> to vector<16x16xf32>
    %81 = vector.extract_strided_slice %20 {offsets = [0, 160], sizes = [16, 16], strides = [1, 1]} : vector<16x192xf32> to vector<16x16xf32>
    %82 = vector.extract_strided_slice %20 {offsets = [0, 176], sizes = [16, 16], strides = [1, 1]} : vector<16x192xf32> to vector<16x16xf32>
    %83 = vector.shape_cast %71 : vector<16x16xf32> to vector<1x16x16xf32>
    %84 = vector.shape_cast %72 : vector<16x16xf32> to vector<1x16x16xf32>
    %85 = vector.shape_cast %73 : vector<16x16xf32> to vector<1x16x16xf32>
    %86 = vector.shape_cast %74 : vector<16x16xf32> to vector<1x16x16xf32>
    %87 = vector.shape_cast %75 : vector<16x16xf32> to vector<1x16x16xf32>
    %88 = vector.shape_cast %76 : vector<16x16xf32> to vector<1x16x16xf32>
    %89 = vector.shape_cast %77 : vector<16x16xf32> to vector<1x16x16xf32>
    %90 = vector.shape_cast %78 : vector<16x16xf32> to vector<1x16x16xf32>
    %91 = vector.shape_cast %79 : vector<16x16xf32> to vector<1x16x16xf32>
    %92 = vector.shape_cast %80 : vector<16x16xf32> to vector<1x16x16xf32>
    %93 = vector.shape_cast %81 : vector<16x16xf32> to vector<1x16x16xf32>
    %94 = vector.shape_cast %82 : vector<16x16xf32> to vector<1x16x16xf32>
    %95 = tpu.concatenate %83, %84, %85, %86, %87, %88, %89, %90, %91, %92, %93, %94 in 0 : vector<1x16x16xf32>, vector<1x16x16xf32>, vector<1x16x16xf32>, vector<1x16x16xf32>, vector<1x16x16xf32>, vector<1x16x16xf32>, vector<1x16x16xf32>, vector<1x16x16xf32>, vector<1x16x16xf32>, vector<1x16x16xf32>, vector<1x16x16xf32>, vector<1x16x16xf32> -> vector<12x16x16xf32>
    %cst_20 = arith.constant dense<0.000000e+00> : vector<12x16x16xf32>
    %96 = tpu.matmul %45, %70, %cst_20 {dimension_numbers = #tpu.dot_dimension_numbers<[2], [2], [1], [1], [0, 0, 0, 1, 1, 1], [0], [0]>} : vector<12x16x16xf32>, vector<12x16x16xf32>, vector<12x16x16xf32> -> vector<12x16x16xf32>
    %c0_21 = arith.constant 0 : index
    %c0_22 = arith.constant 0 : index
    %97 = vector.load %arg1[%c0_21, %c0_22] : memref<16x16xf32, #tpu.memory_space<vmem>>, vector<16x16xf32>
    %98 = vector.shape_cast %97 : vector<16x16xf32> to vector<1x16x16xf32>
    %99 = vector.broadcast %98 : vector<1x16x16xf32> to vector<12x16x16xf32>
    %100 = arith.addf %96, %99 : vector<12x16x16xf32>
    %cst_23 = arith.constant dense<0xFF800000> : vector<12x16xf32>
    %101 = vector.multi_reduction <maximumf>, %100, %cst_23 [2] : vector<12x16x16xf32> to vector<12x16xf32>
    %102 = vector.shape_cast %101 : vector<12x16xf32> to vector<12x16x1xf32>
    %103 = vector.broadcast %102 : vector<12x16x1xf32> to vector<12x16x16xf32>
    %104 = arith.subf %100, %103 : vector<12x16x16xf32>
    %105 = math.exp %104 : vector<12x16x16xf32>
    %cst_24 = arith.constant dense<0.000000e+00> : vector<12x16xf32>
    %106 = vector.multi_reduction <add>, %105, %cst_24 [2] : vector<12x16x16xf32> to vector<12x16xf32>
    %107 = vector.shape_cast %106 : vector<12x16xf32> to vector<12x16x1xf32>
    %108 = vector.broadcast %107 : vector<12x16x1xf32> to vector<12x16x16xf32>
    %109 = arith.divf %105, %108 : vector<12x16x16xf32>
    %cst_25 = arith.constant dense<0.000000e+00> : vector<12x16x16xf32>
    %110 = tpu.matmul %109, %95, %cst_25 {dimension_numbers = #tpu.dot_dimension_numbers<[2], [1], [1], [2], [0, 0, 0, 1, 1, 2], [0], [0]>} : vector<12x16x16xf32>, vector<12x16x16xf32>, vector<12x16x16xf32> -> vector<12x16x16xf32>
    %111 = vector.extract_strided_slice %110 {offsets = [0, 0, 0], sizes = [1, 16, 16], strides = [1, 1, 1]} : vector<12x16x16xf32> to vector<1x16x16xf32>
    %112 = vector.shape_cast %111 : vector<1x16x16xf32> to vector<16x16xf32>
    %113 = vector.extract_strided_slice %110 {offsets = [1, 0, 0], sizes = [1, 16, 16], strides = [1, 1, 1]} : vector<12x16x16xf32> to vector<1x16x16xf32>
    %114 = vector.shape_cast %113 : vector<1x16x16xf32> to vector<16x16xf32>
    %115 = vector.extract_strided_slice %110 {offsets = [2, 0, 0], sizes = [1, 16, 16], strides = [1, 1, 1]} : vector<12x16x16xf32> to vector<1x16x16xf32>
    %116 = vector.shape_cast %115 : vector<1x16x16xf32> to vector<16x16xf32>
    %117 = vector.extract_strided_slice %110 {offsets = [3, 0, 0], sizes = [1, 16, 16], strides = [1, 1, 1]} : vector<12x16x16xf32> to vector<1x16x16xf32>
    %118 = vector.shape_cast %117 : vector<1x16x16xf32> to vector<16x16xf32>
    %119 = vector.extract_strided_slice %110 {offsets = [4, 0, 0], sizes = [1, 16, 16], strides = [1, 1, 1]} : vector<12x16x16xf32> to vector<1x16x16xf32>
    %120 = vector.shape_cast %119 : vector<1x16x16xf32> to vector<16x16xf32>
    %121 = vector.extract_strided_slice %110 {offsets = [5, 0, 0], sizes = [1, 16, 16], strides = [1, 1, 1]} : vector<12x16x16xf32> to vector<1x16x16xf32>
    %122 = vector.shape_cast %121 : vector<1x16x16xf32> to vector<16x16xf32>
    %123 = vector.extract_strided_slice %110 {offsets = [6, 0, 0], sizes = [1, 16, 16], strides = [1, 1, 1]} : vector<12x16x16xf32> to vector<1x16x16xf32>
    %124 = vector.shape_cast %123 : vector<1x16x16xf32> to vector<16x16xf32>
    %125 = vector.extract_strided_slice %110 {offsets = [7, 0, 0], sizes = [1, 16, 16], strides = [1, 1, 1]} : vector<12x16x16xf32> to vector<1x16x16xf32>
    %126 = vector.shape_cast %125 : vector<1x16x16xf32> to vector<16x16xf32>
    %127 = vector.extract_strided_slice %110 {offsets = [8, 0, 0], sizes = [1, 16, 16], strides = [1, 1, 1]} : vector<12x16x16xf32> to vector<1x16x16xf32>
    %128 = vector.shape_cast %127 : vector<1x16x16xf32> to vector<16x16xf32>
    %129 = vector.extract_strided_slice %110 {offsets = [9, 0, 0], sizes = [1, 16, 16], strides = [1, 1, 1]} : vector<12x16x16xf32> to vector<1x16x16xf32>
    %130 = vector.shape_cast %129 : vector<1x16x16xf32> to vector<16x16xf32>
    %131 = vector.extract_strided_slice %110 {offsets = [10, 0, 0], sizes = [1, 16, 16], strides = [1, 1, 1]} : vector<12x16x16xf32> to vector<1x16x16xf32>
    %132 = vector.shape_cast %131 : vector<1x16x16xf32> to vector<16x16xf32>
    %133 = vector.extract_strided_slice %110 {offsets = [11, 0, 0], sizes = [1, 16, 16], strides = [1, 1, 1]} : vector<12x16x16xf32> to vector<1x16x16xf32>
    %134 = vector.shape_cast %133 : vector<1x16x16xf32> to vector<16x16xf32>
    %135 = tpu.concatenate %112, %114, %116, %118, %120, %122, %124, %126, %128, %130, %132, %134 in 1 : vector<16x16xf32>, vector<16x16xf32>, vector<16x16xf32>, vector<16x16xf32>, vector<16x16xf32>, vector<16x16xf32>, vector<16x16xf32>, vector<16x16xf32>, vector<16x16xf32>, vector<16x16xf32>, vector<16x16xf32>, vector<16x16xf32> -> vector<16x192xf32>
    %c0_26 = arith.constant 0 : index
    %c0_27 = arith.constant 0 : index
    %136 = vector.load %arg10[%c0_26, %c0_27] : memref<192x192xf32, #tpu.memory_space<vmem>>, vector<192x192xf32>
    %cst_28 = arith.constant dense<0.000000e+00> : vector<16x192xf32>
    %137 = tpu.matmul %135, %136, %cst_28 {dimension_numbers = #tpu.dot_dimension_numbers<[1], [0], [0], [1], [0, 0, 1, 1], [], []>} : vector<16x192xf32>, vector<192x192xf32>, vector<16x192xf32> -> vector<16x192xf32>
    %c0_29 = arith.constant 0 : index
    %c0_30 = arith.constant 0 : index
    %138 = vector.load %arg11[%c0_29, %c0_30] : memref<1x192xf32, #tpu.memory_space<vmem>>, vector<1x192xf32>
    %139 = vector.broadcast %138 : vector<1x192xf32> to vector<16x192xf32>
    %140 = arith.addf %137, %139 : vector<16x192xf32>
    %c0_31 = arith.constant 0 : index
    %c0_32 = arith.constant 0 : index
    %141 = vector.load %arg12[%c0_31, %c0_32] : memref<16x192xf32, #tpu.memory_space<vmem>>, vector<16x192xf32>
    tpu.vector_store %arg12[%c0_31, %c0_32], %140 {strides = array<i32>} : memref<16x192xf32, #tpu.memory_space<vmem>>, vector<16x192xf32>,
    return
  }
}

</mosaic_0001>

<bundles_post_ra>
// kernel: tpu_custom_call.1
= control target key start
LH: loop header
LB: loop body
LE: loop exit
PB: predicated region body
PF: predicated region fallthrough
CT: control target
= control target key end

     0   :  { %17 = vsyncpa [#allocation3], 0  ;;  %s4709_s0 = inlined_call_operand.hbm [shape: f32[16,80], index: 0, kind: input, shape index: {}]   ;;  %s4710_s1 = inlined_call_operand.hbm [shape: f32[16,16], index: 1, kind: input, shape index: {}]   ;;  %s4711_s2 = inlined_call_operand.hbm [shape: f32[80,96], index: 2, kind: input, shape index: {}]   ;;  %s4712_s3 = inlined_call_operand.vmem [shape: f32[1,96], index: 3, kind: input, shape index: {}]   ;;  %s4713_s4 = inlined_call_operand.hbm [shape: f32[96,192], index: 4, kind: input, shape index: {}]   ;;  %s4714_s5 = inlined_call_operand.vmem [shape: f32[1,192], index: 5, kind: input, shape index: {}]   ;;  %s4715_s6 = inlined_call_operand.hbm [shape: f32[96,192], index: 6, kind: input, shape index: {}]   ;;  %s4716_s7 = inlined_call_operand.vmem [shape: f32[1,192], index: 7, kind: input, shape index: {}]   ;;  %s4717_s8 = inlined_call_operand.hbm [shape: f32[96,192], index: 8, kind: input, shape index: {}]   ;;  %s4718_s9 = inlined_call_operand.vmem [shape: f32[1,192], index: 9, kind: input, shape index: {}]   ;;  %s4719_s10 = inlined_call_operand.hbm [shape: f32[192,192], index: 10, kind: input, shape index: {}]   ;;  %s4720_s11 = inlined_call_operand.vmem [shape: f32[1,192], index: 11, kind: input, shape index: {}]   ;;  %s4721_s12 = inlined_call_operand.hbm [shape: f32[16,192], index: 12, kind: output, shape index: {}]  }
   0x1   :  { %18 = vsyncpa [#allocation6], 0 }
   0x2   :  { %19 = vsyncpa [#allocation9], 0 }
   0x3   :  { %20 = vsyncpa [#allocation12], 0 }
   0x4   :  { %21 = vsyncpa [#allocation4], 0  ;;  %s3939_s21 = smov [#allocation5]   ;;  %s3940_s23 = smov [#allocation8]  }
   0x5   :  { %s39_s22 = sshll.u32 %s3939_s21, 4  ;;  %s65_s24 = sshll.u32 %s3940_s23, 4  ;;  %s40_s22 = int_to_ptr.vmem [resolvable:$true] %s39_s22  ;;  %s66_s24 = int_to_ptr.vmem [resolvable:$true] %s65_s24 }
   0x6   :  { %s3777_s25 = scalar_lea.vmem %s40_s22, 256  ;;  %p3782_p1 = scmp.lt.s32.totalorder %s40_s22, %s40_s22 }
   0x7   :  { %p3778_p0 = scmp.ne.s32.totalorder %s40_s22, %s3777_s25  ;;  %p3783_p2 = scmp.lt.s32.totalorder %s3777_s25, %s3777_s25 }
   0x9   :  { %p3784_p3 = por %p3783_p2, %p3782_p1 }
   0xb   :  { %p3785_p4 = pnand %p3784_p3, %p3778_p0 }
   0xd   :  { %3788 = shalt.err (!%p3785_p4)
}
   0xe   :  { %s3941_s26 = smov 128   ;;  %s3942_s27 = smov 8  }
   0xf   :  { %45 = dma.hbm_to_vmem [thread:$0]  %s4710_s1, 256, %s40_s22, [#allocation6], %s3941_s26, %s3941_s26, %s3942_s27  }
  0x10   :  { %s3797_s30 = scalar_lea.vmem %s66_s24, 3072  ;;  %p3802_p6 = scmp.lt.s32.totalorder %s66_s24, %s66_s24 }
  0x11   :  { %p3798_p5 = scmp.ne.s32.totalorder %s66_s24, %s3797_s30  ;;  %p3803_p7 = scmp.lt.s32.totalorder %s3797_s30, %s3797_s30 }
  0x13   :  { %p3804_p8 = por %p3803_p7, %p3802_p6 }
  0x15   :  { %p3805_p9 = pnand %p3804_p8, %p3798_p5 }
  0x17   :  { %3808 = shalt.err (!%p3805_p9)
}
  0x18   :  { %s3943_s13 = smov 256   ;;  %s3944_s14 = smov 16  }
  0x19   :  { %71 = dma.hbm_to_vmem [thread:$0]  %s4713_s4, 3072, %s66_s24, [#allocation9], %s3943_s13, %s3943_s13, %s3944_s14  }
  0x1a   :  { %s3945_s17 = smov [#allocation11]   ;;  %s3946_s19 = smov [#allocation2]  }
  0x1b   :  { %s93_s18 = sshll.u32 %s3945_s17, 4  ;;  %s27_s1 = sshll.u32 %s3946_s19, 4  ;;  %s94_s18 = int_to_ptr.vmem [resolvable:$true] %s93_s18  ;;  %s28_s1 = int_to_ptr.vmem [resolvable:$true] %s27_s1 }
  0x1c   :  { %s3817_s20 = scalar_lea.vmem %s94_s18, 3072  ;;  %p3822_p11 = scmp.lt.s32.totalorder %s94_s18, %s94_s18 }
  0x1d   :  { %p3818_p10 = scmp.ne.s32.totalorder %s94_s18, %s3817_s20  ;;  %p3823_p12 = scmp.lt.s32.totalorder %s3817_s20, %s3817_s20 }
  0x1f   :  { %p3824_p13 = por %p3823_p12, %p3822_p11 }
  0x21   :  { %p3825_p0 = pnand %p3824_p13, %p3818_p10 }
  0x23   :  { %3828 = shalt.err (!%p3825_p0)
}
  0x24   :  { %99 = dma.hbm_to_vmem [thread:$0]  %s4717_s8, 3072, %s94_s18, [#allocation12], %s3943_s13, %s3943_s13, %s3944_s14  }
  0x25   :  { %s3837_s4 = scalar_lea.vmem %s28_s1, 256  ;;  %p3842_p2 = scmp.lt.s32.totalorder %s28_s1, %s28_s1 }
  0x26   :  { %p3838_p1 = scmp.ne.s32.totalorder %s28_s1, %s3837_s4  ;;  %p3843_p3 = scmp.lt.s32.totalorder %s3837_s4, %s3837_s4 }
  0x28   :  { %p3844_p4 = por %p3843_p3, %p3842_p2 }
  0x2a   :  { %p3845_p5 = pnand %p3844_p4, %p3838_p1 }
  0x2c   :  { %3848 = shalt.err (!%p3845_p5)
}
  0x2d   :  { %33 = dma.hbm_to_vmem [thread:$0]  %s4709_s0, 256, %s28_s1, [#allocation3], %s3941_s26, %s3941_s26, %s3942_s27  }
  0x2e   :  { %s3947_s25 = smov [#allocation7]   ;;  %s3948_s29 = smov [#allocation10]  }
  0x2f   :  { %s51_s28 = sshll.u32 %s3947_s25, 4  ;;  %s79_s30 = sshll.u32 %s3948_s29, 4  ;;  %s52_s28 = int_to_ptr.vmem [resolvable:$true] %s51_s28  ;;  %s80_s30 = int_to_ptr.vmem [resolvable:$true] %s79_s30 }
  0x30   :  { %s3857_s8 = scalar_lea.vmem %s52_s28, 1280  ;;  %p3862_p7 = scmp.lt.s32.totalorder %s52_s28, %s52_s28 }
  0x31   :  { %p3858_p6 = scmp.ne.s32.totalorder %s52_s28, %s3857_s8  ;;  %p3863_p8 = scmp.lt.s32.totalorder %s3857_s8, %s3857_s8 }
  0x33   :  { %p3864_p9 = por %p3863_p8, %p3862_p7 }
  0x35   :  { %p3865_p10 = pnand %p3864_p9, %p3858_p6 }
  0x37   :  { %3868 = shalt.err (!%p3865_p10)
}
  0x38   :  { %57 = dma.hbm_to_vmem [thread:$0]  %s4711_s2, 1280, %s52_s28, [#allocation6], %s3941_s26, %s3941_s26, %s3942_s27  }
  0x39   :  { %s3877_s0 = scalar_lea.vmem %s80_s30, 3072  ;;  %p3882_p12 = scmp.lt.s32.totalorder %s80_s30, %s80_s30 }
  0x3a   :  { %p3878_p11 = scmp.ne.s32.totalorder %s80_s30, %s3877_s0  ;;  %p3883_p13 = scmp.lt.s32.totalorder %s3877_s0, %s3877_s0 }
  0x3c   :  { %p3884_p0 = por %p3883_p13, %p3882_p12 }
  0x3e   :  { %p3885_p1 = pnand %p3884_p0, %p3878_p11 }
  0x40   :  { %3888 = shalt.err (!%p3885_p1)
}
  0x41   :  { %85 = dma.hbm_to_vmem [thread:$0]  %s4715_s6, 3072, %s80_s30, [#allocation9], %s3943_s13, %s3943_s13, %s3944_s14  }
  0x42   :  { %s3949_s19 = smov [#allocation13]  }
  0x43   :  { %s107_s1 = sshll.u32 %s3949_s19, 4  ;;  %s108_s1 = int_to_ptr.vmem [resolvable:$true] %s107_s1 }
  0x44   :  { %s3897_s20 = scalar_lea.vmem %s108_s1, 6144  ;;  %p3902_p3 = scmp.lt.s32.totalorder %s108_s1, %s108_s1 }
  0x45   :  { %p3898_p2 = scmp.ne.s32.totalorder %s108_s1, %s3897_s20  ;;  %p3903_p4 = scmp.lt.s32.totalorder %s3897_s20, %s3897_s20 }
  0x47   :  { %p3904_p5 = por %p3903_p4, %p3902_p3 }
  0x49   :  { %p3905_p6 = pnand %p3904_p5, %p3898_p2 }
  0x4b   :  { %3908 = shalt.err (!%p3905_p6)
}
  0x4c   :  { %113 = dma.hbm_to_vmem [thread:$0]  %s4719_s10, 6144, %s108_s1, [#allocation12], %s3943_s13, %s3943_s13, %s3944_s14  }
  0x4d   :  { %3929 = dma.done.wait [#allocation3], 256  }
  0x4e   :  { %3930 = vsyncadd [#allocation3], 4294967040 }
  0x4f   :  { %3931 = dma.done.wait [#allocation6], 1536  }
  0x50   :  { %3932 = vsyncadd [#allocation6], 4294965760 }
  0x51   :  { %3933 = dma.done.wait [#allocation9], 6144  }
  0x52   :  { %3934 = vsyncadd [#allocation9], 4294961152 }
  0x53   :  { %3935 = dma.done.wait [#allocation12], 9216  }
  0x54   :  { %3936 = vsyncadd [#allocation12], 4294958080  ;;  %v148_v0 = vld [vmem:[#allocation7 + $0x48] sm:$0xff]  ;;  %v147_v1 = vld [vmem:[#allocation7 + $0x40] sm:$0xff]  ;;  %vm156_vm0 = vcmask 654336   ;;  %v3950_v61 = vmov 0.0  }
  0x55   :  { %3433 = vmatprep.subr.mxu0 %v148_v0  ;;  %v146_v2 = vld [vmem:[#allocation7 + $0x38] sm:$0xff]  ;;  %v137_v3 = vld [vmem:[#allocation2] sm:$0xff]  ;;  %v145_v4 = vld [vmem:[#allocation7 + $0x30] sm:$0xff]  ;;  %571 = vmatprep.mubr.f32.mxu1 %v3950_v61  ;;  %vm274_vm1 = vcmask 785408   ;;  %vm738_vm2 = vcmask 130048   ;;  %s3951_s21 = smov 96  }
  0x56   :  { %3434 = vmatpush3.msra.mxu0 %v148_v0  ;;  %3453 = vmatprep.mubr.msk.f32.mxu0 %vm156_vm0, %v137_v3  ;;  %v494_v5 = vld [vmem:[#allocation11 + $0xb8] sm:$0xff]  ;;  %v493_v6 = vld [vmem:[#allocation11 + $0xb0] sm:$0xff]  ;;  %v492_v8 = vld [vmem:[#allocation11 + $0xa8] sm:$0xff]  ;;  %s3952_s22 = smov 112   ;;  %s3953_s4 = smov 64   ;;  %vm3053_vm3 = vcmask 261120  }
  0x57   :  { %3435 = vmatprep.subr.mxu0 %v147_v1  ;;  %515 = vmatprep.subr.mxu1 %v494_v5  ;;  %v144_v7 = vld [vmem:[#allocation7 + $0x28] sm:$0xff]  ;;  %v491_v9 = vld [vmem:[#allocation11 + $0xa0] sm:$0xff]  ;;  %v143_v11 = vld [vmem:[#allocation7 + $0x20] sm:$0xff]  ;;  %s3954_s23 = smov 80   ;;  %vm3056_vm4 = vcmask 392192   ;;  %vm3059_vm5 = vcmask 523264  }
  0x58   :  { %3436 = vmatpush3.msra.mxu0 %v147_v1  ;;  %516 = vmatpush1.msra.mxu1 %v493_v6  ;;  %v490_v10 = vld [vmem:[#allocation11 + $0x98] sm:$0xff]  ;;  %v489_v12 = vld [vmem:[#allocation11 + $0x90] sm:$0xff]  ;;  %v488_v13 = vld [vmem:[#allocation11 + $0x88] sm:$0xff]  ;;  %vm3066_vm6 = vcmask 916480   ;;  %s3957_s8 = smov [#allocation14]  }
  0x59   :  { %3437 = vmatprep.subr.mxu0 %v146_v2  ;;  %517 = vmatprep.subr.mxu1 %v492_v8  ;;  %v487_v14 = vld [vmem:[#allocation11 + $0x80] sm:$0xff]  ;;  %v142_v15 = vld [vmem:[#allocation7 + $0x18] sm:$0xff]  ;;  %v486_v16 = vld [vmem:[#allocation11 + $0x78] sm:$0xff]  ;;  %s3227_s15 = sshll.u32 %s3957_s8, 4  ;;  %s3228_s15 = int_to_ptr.vmem [resolvable:$true] %s3227_s15 }
  0x5a   :  { %3438 = vmatpush3.msra.mxu0 %v146_v2  ;;  %518 = vmatpush1.msra.mxu1 %v491_v9  ;;  %v485_v17 = vld [vmem:[#allocation11 + $0x70] sm:$0xff]  ;;  %v141_v18 = vld [vmem:[#allocation7 + $0x10] sm:$0xff]  ;;  %v484_v19 = vld [vmem:[#allocation11 + $0x68] sm:$0xff]  ;;  %p3914_p8 = scmp.lt.s32.totalorder %s3228_s15, %s3228_s15 }
  0x5b   :  { %3439 = vmatprep.subr.mxu0 %v145_v4  ;;  %519 = vmatprep.subr.mxu1 %v490_v10  ;;  %v483_v20 = vld [vmem:[#allocation11 + $0x60] sm:$0xff]  ;;  %v140_v21 = vld [vmem:[#allocation7 + $0x8] sm:$0xff]  ;;  %v481_v23 = vld [vmem:[#allocation11 + $0x50] sm:$0xff] }
  0x5c   :  { %3440 = vmatpush3.msra.mxu0 %v145_v4  ;;  %520 = vmatpush1.msra.mxu1 %v489_v12  ;;  %v482_v22 = vld [vmem:[#allocation11 + $0x58] sm:$0xff]  ;;  %v139_v24 = vld [vmem:[#allocation7] sm:$0xff]  ;;  %v480_v25 = vld [vmem:[#allocation11 + $0x48] sm:$0xff] }
  0x5d   :  { %3441 = vmatprep.subr.mxu0 %v144_v7  ;;  %521 = vmatprep.subr.mxu1 %v488_v13  ;;  %v479_v26 = vld [vmem:[#allocation11 + $0x40] sm:$0xff]  ;;  %v138_v27 = vld [vmem:[#allocation2 + $0x8] sm:$0xff]  ;;  %v260_v29 = vld [vmem:[#allocation8 + $0xb0] sm:$0xff] }
  0x5e   :  { %3442 = vmatpush3.msra.mxu0 %v144_v7  ;;  %522 = vmatpush1.msra.mxu1 %v487_v14  ;;  %v261_v28 = vld [vmem:[#allocation8 + $0xb8] sm:$0xff]  ;;  %v259_v31 = vld [vmem:[#allocation8 + $0xa8] sm:$0xff]  ;;  %v477_v32 = vld [vmem:[#allocation11 + $0x30] sm:$0xff] }
  0x5f   :  { %3443 = vmatprep.subr.mxu0 %v143_v11  ;;  %523 = vmatprep.subr.mxu1 %v486_v16  ;;  %v478_v30 = vld [vmem:[#allocation11 + $0x38] sm:$0xff]  ;;  %v258_v33 = vld [vmem:[#allocation8 + $0xa0] sm:$0xff]  ;;  %v476_v34 = vld [vmem:[#allocation11 + $0x28] sm:$0xff] }
  0x60   :  { %3444 = vmatpush3.msra.mxu0 %v143_v11  ;;  %524 = vmatpush1.msra.mxu1 %v485_v17  ;;  %v257_v35 = vld [vmem:[#allocation8 + $0x98] sm:$0xff]  ;;  %v256_v36 = vld [vmem:[#allocation8 + $0x90] sm:$0xff]  ;;  %v255_v37 = vld [vmem:[#allocation8 + $0x88] sm:$0xff] }
  0x61   :  { %3445 = vmatprep.subr.mxu0 %v142_v15  ;;  %525 = vmatprep.subr.mxu1 %v484_v19  ;;  %v254_v38 = vld [vmem:[#allocation8 + $0x80] sm:$0xff]  ;;  %v253_v39 = vld [vmem:[#allocation8 + $0x78] sm:$0xff]  ;;  %v252_v40 = vld [vmem:[#allocation8 + $0x70] sm:$0xff] }
  0x62   :  { %3446 = vmatpush3.msra.mxu0 %v142_v15  ;;  %526 = vmatpush1.msra.mxu1 %v483_v20  ;;  %v251_v41 = vld [vmem:[#allocation8 + $0x68] sm:$0xff]  ;;  %v250_v42 = vld [vmem:[#allocation8 + $0x60] sm:$0xff]  ;;  %v249_v43 = vld [vmem:[#allocation8 + $0x58] sm:$0xff] }
  0x63   :  { %3447 = vmatprep.subr.mxu0 %v141_v18  ;;  %527 = vmatprep.subr.mxu1 %v482_v22  ;;  %v248_v44 = vld [vmem:[#allocation8 + $0x50] sm:$0xff]  ;;  %v247_v45 = vld [vmem:[#allocation8 + $0x48] sm:$0xff]  ;;  %v246_v46 = vld [vmem:[#allocation8 + $0x40] sm:$0xff] }
  0x64   :  { %3448 = vmatpush3.msra.mxu0 %v141_v18  ;;  %528 = vmatpush1.msra.mxu1 %v481_v23  ;;  %v245_v47 = vld [vmem:[#allocation8 + $0x38] sm:$0xff]  ;;  %v244_v48 = vld [vmem:[#allocation8 + $0x30] sm:$0xff]  ;;  %v243_v49 = vld [vmem:[#allocation8 + $0x28] sm:$0xff] }
  0x65   :  { %3449 = vmatprep.subr.mxu0 %v140_v21  ;;  %529 = vmatprep.subr.mxu1 %v480_v25  ;;  %v242_v50 = vld [vmem:[#allocation8 + $0x20] sm:$0xff]  ;;  %v241_v51 = vld [vmem:[#allocation8 + $0x18] sm:$0xff]  ;;  %v240_v53 = vld [vmem:[#allocation8 + $0x10] sm:$0xff] }
  0x66   :  { %3450 = vmatpush3.msra.mxu0 %v140_v21  ;;  %530 = vmatpush1.msra.mxu1 %v479_v26  ;;  %v475_v52 = vld [vmem:[#allocation11 + $0x20] sm:$0xff]  ;;  %v474_v54 = vld [vmem:[#allocation11 + $0x18] sm:$0xff]  ;;  %v239_v55 = vld [vmem:[#allocation8 + $0x8] sm:$0xff]  ;;  %v264_v26 = vlaneseq }
  0x67   :  { %3451 = vmatprep.subr.mxu0 %v139_v24  ;;  %531 = vmatprep.subr.mxu1 %v478_v30  ;;  %v473_v56 = vld [vmem:[#allocation11 + $0x10] sm:$0xff]  ;;  %v238_v57 = vld [vmem:[#allocation8] sm:$0xff]  ;;  %v472_v58 = vld [vmem:[#allocation11 + $0x8] sm:$0xff] }
  0x68   :  { %3452 = vmatpush3.msra.mxu0 %v139_v24  ;;  %532 = vmatpush1.msra.mxu1 %v477_v32  ;;  %v381_v59 = vld [vmem:[#allocation10 + $0xb8] sm:$0xff]  ;;  %v471_v60 = vld [vmem:[#allocation11] sm:$0xff]  ;;  %v3242_v63 = vld [vmem:[%s4712_s3] ss:$0 sm:$0xff] }
  0x69   :  { %3454 = vmatmul.mubr.msk.f32.vlgmr.msra.gmra.mxu0 %vm156_vm0, %v138_v27  ;;  %289 = vmatprep.subr.mxu0 %v261_v28  ;;  %v380_v2 = vld [vmem:[#allocation10 + $0xb0] sm:$0xff]  ;;  %v379_v3 = vld [vmem:[#allocation10 + $0xa8] sm:$0xff]  ;;  %v378_v4 = vld [vmem:[#allocation10 + $0xa0] sm:$0xff]  ;;  %v265_v27 = vshrl.u32 %v264_v26, 7 }
  0x6a   :  { %290 = vmatpush1.msra.mxu0 %v260_v29  ;;  %533 = vmatprep.subr.mxu1 %v476_v34  ;;  %v377_v5 = vld [vmem:[#allocation10 + $0x98] sm:$0xff]  ;;  %v376_v7 = vld [vmem:[#allocation10 + $0x90] sm:$0xff]  ;;  %v375_v8 = vld [vmem:[#allocation10 + $0x88] sm:$0xff] }
  0x6b   :  { %291 = vmatprep.subr.mxu0 %v259_v31  ;;  %534 = vmatpush1.msra.mxu1 %v475_v52  ;;  %v374_v9 = vld [vmem:[#allocation10 + $0x80] sm:$0xff]  ;;  %v373_v10 = vld [vmem:[#allocation10 + $0x78] sm:$0xff]  ;;  %v372_v11 = vld [vmem:[#allocation10 + $0x70] sm:$0xff]  ;;  %v4082_v28 = vsub.s32 0, %v265_v27 }
  0x6c   :  { %292 = vmatpush1.msra.mxu0 %v258_v33  ;;  %535 = vmatprep.subr.mxu1 %v474_v54  ;;  %v371_v12 = vld [vmem:[#allocation10 + $0x68] sm:$0xff]  ;;  %v370_v13 = vld [vmem:[#allocation10 + $0x60] sm:$0xff]  ;;  %v369_v14 = vld [vmem:[#allocation10 + $0x58] sm:$0xff] }
  0x6d   :  { %293 = vmatprep.subr.mxu0 %v257_v35  ;;  %536 = vmatpush1.msra.mxu1 %v473_v56  ;;  %v368_v15 = vld [vmem:[#allocation10 + $0x50] sm:$0xff]  ;;  %v367_v16 = vld [vmem:[#allocation10 + $0x48] sm:$0xff]  ;;  %v366_v17 = vld [vmem:[#allocation10 + $0x40] sm:$0xff] }
  0x6e   :  { %294 = vmatpush1.msra.mxu0 %v256_v36  ;;  %537 = vmatprep.subr.mxu1 %v472_v58  ;;  %v365_v18 = vld [vmem:[#allocation10 + $0x38] sm:$0xff]  ;;  %v364_v19 = vld [vmem:[#allocation10 + $0x30] sm:$0xff]  ;;  %v363_v20 = vld [vmem:[#allocation10 + $0x28] sm:$0xff] }
  0x6f   :  { %295 = vmatprep.subr.mxu0 %v255_v37  ;;  %345 = vmatprep.mubr.f32.mxu0 %v3950_v61  ;;  %v362_v21 = vld [vmem:[#allocation10 + $0x20] sm:$0xff]  ;;  %v361_v22 = vld [vmem:[#allocation10 + $0x18] sm:$0xff]  ;;  %v360_v23 = vld [vmem:[#allocation10 + $0x10] sm:$0xff] }
  0x70   :  { %296 = vmatpush1.msra.mxu0 %v254_v38  ;;  %538 = vmatpush1.msra.mxu1 %v471_v60  ;;  %v359_v24 = vld [vmem:[#allocation10 + $0x8] sm:$0xff]  ;;  %v358_v25 = vld [vmem:[#allocation10] sm:$0xff]  ;;  %v262_v29 = vld [vmem:[%s4714_s5] sm:$0x3]  ;;  %s3955_s5 = smov 48  }
  0x71   :  { %297 = vmatprep.subr.mxu0 %v253_v39  ;;  %v267_v30 = vrot.slane %v262_v29, %v4082_v28  ;;  %v382_v36 = vld [vmem:[%s4716_s7] sm:$0x3]  ;;  %s3956_s7 = smov 32  }
  0x72   :  { %298 = vmatpush1.msra.mxu0 %v252_v40  ;;  %v387_v37 = vrot.slane %v382_v36, %v4082_v28  ;;  %v495_v54 = vld [vmem:[%s4718_s9] sm:$0x3] }
  0x73   :  { %299 = vmatprep.subr.mxu0 %v251_v41  ;;  %v500_v56 = vrot.slane %v495_v54, %v4082_v28 }
  0x74   :  { %300 = vmatpush1.msra.mxu0 %v250_v42 }
  0x75   :  { %301 = vmatprep.subr.mxu0 %v249_v43 }
  0x76   :  { %302 = vmatpush1.msra.mxu0 %v248_v44  ;;  %v4119_v44 = vsub.s32 1, %v265_v27 }
  0x77   :  { %303 = vmatprep.subr.mxu0 %v247_v45 }
  0x78   :  { %304 = vmatpush1.msra.mxu0 %v246_v46  ;;  %v391_v45 = vrot.slane %v382_v36, %v4119_v44  ;;  %v271_v46 = vrot.slane %v262_v29, %v4119_v44 }
  0x79   :  { %305 = vmatprep.subr.mxu0 %v245_v47 }
  0x7a   :  { %306 = vmatpush1.msra.mxu0 %v244_v48 }
  0x7b   :  { %307 = vmatprep.subr.mxu0 %v243_v49 }
  0x7c   :  { %308 = vmatpush1.msra.mxu0 %v242_v50 }
  0x7d   :  { %309 = vmatprep.subr.mxu0 %v241_v51 }
  0x7e   :  { %310 = vmatpush1.msra.mxu0 %v240_v53 }
  0x7f   :  { %311 = vmatprep.subr.mxu0 %v239_v55 }
  0x80   :  { %312 = vmatpush1.msra.mxu0 %v238_v57 }
  0x81   :  { %402 = vmatprep.subr.mxu0 %v381_v59  ;;  %v504_v59 = vrot.slane %v495_v54, %v4119_v44 }
 0x129   :  { %v3455_v62 = vpop.f32.mrf.mxu0 }
 0x12a   :  { %v235_v6 = vadd.f32 %v3455_v62, %v3242_v63 }
 0x12b   :  { %v229_v0 = vpop.f32.mrf.mxu0 }
 0x12c   :  { %v230_v1 = vadd.f32 %v3242_v63, %v229_v0 }
 0x12e   :  { %3245 = vmatmul.mubr.msk.f32.vlgmr.msra.gmra.mxu0 %vm274_vm1, %v230_v1  ;;  %3249 = vmatmul.mubr.msk.f32.vlgmr.msra.gmra.mxu1 %vm274_vm1, %v230_v1 }
 0x12f   :  { %403 = vmatpush1.msra.mxu0 %v380_v2  ;;  %351 = vmatprep.mubr.f32.mxu0 %v3950_v61 }
 0x130   :  { %404 = vmatprep.subr.mxu0 %v379_v3  ;;  %577 = vmatprep.mubr.f32.mxu1 %v3950_v61 }
 0x131   :  { %405 = vmatpush1.msra.mxu0 %v378_v4 }
 0x132   :  { %406 = vmatprep.subr.mxu0 %v377_v5  ;;  %3246 = vmatmul.mubr.msk.f32.gmra.mxu0 %vm274_vm1, %v235_v6 }
 0x133   :  { %407 = vmatpush1.msra.mxu0 %v376_v7  ;;  %3250 = vmatmul.mubr.msk.f32.gmra.mxu1 %vm274_vm1, %v235_v6 }
 0x134   :  { %408 = vmatprep.subr.mxu0 %v375_v8  ;;  %458 = vmatprep.mubr.f32.mxu0 %v3950_v61 }
 0x135   :  { %409 = vmatpush1.msra.mxu0 %v374_v9 }
 0x136   :  { %410 = vmatprep.subr.mxu0 %v373_v10 }
 0x137   :  { %411 = vmatpush1.msra.mxu0 %v372_v11 }
 0x138   :  { %412 = vmatprep.subr.mxu0 %v371_v12 }
 0x139   :  { %413 = vmatpush1.msra.mxu0 %v370_v13 }
 0x13a   :  { %414 = vmatprep.subr.mxu0 %v369_v14 }
 0x13b   :  { %415 = vmatpush1.msra.mxu0 %v368_v15 }
 0x13c   :  { %416 = vmatprep.subr.mxu0 %v367_v16 }
 0x13d   :  { %417 = vmatpush1.msra.mxu0 %v366_v17 }
 0x13e   :  { %418 = vmatprep.subr.mxu0 %v365_v18 }
 0x13f   :  { %419 = vmatpush1.msra.mxu0 %v364_v19 }
 0x140   :  { %420 = vmatprep.subr.mxu0 %v363_v20 }
 0x141   :  { %421 = vmatpush1.msra.mxu0 %v362_v21 }
 0x142   :  { %422 = vmatprep.subr.mxu0 %v361_v22 }
 0x143   :  { %423 = vmatpush1.msra.mxu0 %v360_v23 }
 0x144   :  { %424 = vmatprep.subr.mxu0 %v359_v24 }
 0x145   :  { %425 = vmatpush1.msra.mxu0 %v358_v25 }
 0x146   :  { %3247 = vmatmul.mubr.msk.f32.vlgmr.msra.gmra.mxu0 %vm274_vm1, %v230_v1 }
 0x147   :  { %464 = vmatprep.mubr.f32.mxu0 %v3950_v61 }
 0x14a   :  { %3248 = vmatmul.mubr.msk.f32.gmra.mxu0 %vm274_vm1, %v235_v6 }
 0x1ee   :  { %v347_v31 = vpop.f32.mrf.mxu0  ;;  %v573_v52 = vpop.f32.mrf.mxu1 }
 0x1ef   :  { %v348_v32 = vadd.f32 %v347_v31, %v267_v30  ;;  %v4172_v58 = vadd.f32 %v573_v52, %v500_v56 }
 0x1f0   :  { %v349_v33 = vpop.f32.mrf.mxu0  ;;  %v575_v53 = vpop.f32.mrf.mxu1 }
 0x1f1   :  { %590 = vrot.lane.b32.xlu0 %v348_v32, %s3951_s21  ;;  %586 = vrot.lane.b32.xlu1 %v348_v32, %s3952_s22  ;;  %v4131_v48 = vadd.f32 %v349_v33, %v271_v46  ;;  %v4201_v62 = vadd.f32 %v575_v53, %v504_v59 }
 0x1f2   :  { %3460 = vmatprep.mubr.msk.f32.mxu0 %vm738_vm2, %v348_v32  ;;  %v353_v34 = vpop.f32.mrf.mxu0 }
 0x1f3   :  { %v354_v35 = vadd.f32 %v353_v34, %v267_v30  ;;  %v579_v55 = vpop.f32.mrf.mxu1 }
 0x1f4   :  { %v355_v38 = vpop.f32.mrf.mxu0  ;;  %v4162_v57 = vadd.f32 %v579_v55, %v500_v56 }
 0x1f5   :  { %598 = vrot.lane.b32.xlu0 %v348_v32, %s3953_s4  ;;  %594 = vrot.lane.b32.xlu1 %v348_v32, %s3954_s23  ;;  %v4141_v51 = vadd.f32 %v355_v38, %v271_v46  ;;  %v581_v60 = vpop.f32.mrf.mxu1  ;;  %v4291_v46 = vld [vmem:[#allocation5 + $0x8] sm:$0xff] }
 0x1f6   :  { %v4199_v61 = vadd.f32 %v581_v60, %v504_v59 }
 0x1f9   :  { %592 = vrot.lane.b32.xlu0 %v354_v35, %s3951_s21  ;;  %602 = vrot.lane.b32.xlu1 %v348_v32, %s3955_s5 }
 0x1fd   :  { %600 = vrot.lane.b32.xlu0 %v354_v35, %s3953_s4  ;;  %588 = vrot.lane.b32.xlu1 %v354_v35, %s3952_s22 }
 0x201   :  { %596 = vrot.lane.b32.xlu1 %v354_v35, %s3954_s23 }
 0x205   :  { %604 = vrot.lane.b32.xlu1 %v354_v35, %s3955_s5 }
 0x206   :  { %v460_v39 = vpop.f32.mrf.mxu0 }
 0x207   :  { %v461_v40 = vadd.f32 %v460_v39, %v387_v37 }
 0x208   :  { %v462_v41 = vpop.f32.mrf.mxu0 }
 0x209   :  { %630 = vrot.lane.b32.xlu0 %v461_v40, %s3952_s22  ;;  %638 = vrot.lane.b32.xlu1 %v461_v40, %s3954_s23  ;;  %v4126_v47 = vadd.f32 %v462_v41, %v391_v45 }
 0x20a   :  { %v466_v42 = vpop.f32.mrf.mxu0 }
 0x20b   :  { %v467_v43 = vadd.f32 %v466_v42, %v387_v37 }
 0x20c   :  { %v468_v49 = vpop.f32.mrf.mxu0 }
 0x20d   :  { %3456 = vmatprep.subr.msk.mxu0 %vm738_vm2, %v467_v43  ;;  %634 = vrot.lane.b32.xlu0 %v461_v40, %s3951_s21  ;;  %v4136_v50 = vadd.f32 %v468_v49, %v391_v45 }
 0x20e   :  { %3457 = vmatpush3.xpose.msk.msra.mxu0 %vm738_vm2, %v467_v43  ;;  %646 = vrot.lane.b32.xlu1 %v461_v40, %s3955_s5 }
 0x20f   :  { %3458 = vmatprep.subr.msk.mxu0 %vm738_vm2, %v461_v40 }
 0x211   :  { %642 = vrot.lane.b32.xlu0 %v461_v40, %s3953_s4 }
 0x212   :  { %3459 = vmatpush3.xpose.msk.msra.mxu0 %vm738_vm2, %v461_v40  ;;  %636 = vrot.lane.b32.xlu1 %v467_v43, %s3951_s21 }
 0x215   :  { %632 = vrot.lane.b32.xlu0 %v467_v43, %s3952_s22  ;;  %3461 = vmatmul.mubr.msk.f32.vlgmr.msra.gmra.mxu0 %vm738_vm2, %v354_v35 }
 0x216   :  { %654 = vrot.lane.b32.xlu1 %v461_v40, %s3944_s14 }
 0x219   :  { %650 = vrot.lane.b32.xlu0 %v461_v40, %s3956_s7 }
 0x21a   :  { %644 = vrot.lane.b32.xlu1 %v467_v43, %s3953_s4 }
 0x21d   :  { %640 = vrot.lane.b32.xlu0 %v467_v43, %s3954_s23 }
 0x21e   :  { %608 = vrot.lane.b32.xlu1 %v354_v35, %s3956_s7 }
 0x221   :  { %606 = vrot.lane.b32.xlu0 %v348_v32, %s3956_s7 }
 0x222   :  { %652 = vrot.lane.b32.xlu1 %v467_v43, %s3956_s7 }
 0x225   :  { %648 = vrot.lane.b32.xlu0 %v467_v43, %s3955_s5 }
 0x226   :  { %660 = vrot.lane.b32.xlu1 %v4126_v47, %s3952_s22 }
 0x229   :  { %610 = vrot.lane.b32.xlu0 %v348_v32, %s3944_s14 }
 0x22a   :  { %616 = vrot.lane.b32.xlu1 %v4131_v48, %s3952_s22 }
 0x22d   :  { %656 = vrot.lane.b32.xlu0 %v467_v43, %s3944_s14 }
 0x22e   :  { %662 = vrot.lane.b32.xlu1 %v4136_v50, %s3952_s22 }
 0x231   :  { %612 = vrot.lane.b32.xlu0 %v354_v35, %s3944_s14 }
 0x232   :  { %618 = vrot.lane.b32.xlu1 %v4141_v51, %s3952_s22 }
 0x235   :  { %664 = vrot.lane.b32.xlu0 %v4126_v47, %s3951_s21 }
 0x236   :  { %668 = vrot.lane.b32.xlu1 %v4126_v47, %s3954_s23 }
 0x239   :  { %666 = vrot.lane.b32.xlu0 %v4136_v50, %s3951_s21 }
 0x23a   :  { %622 = vrot.lane.b32.xlu1 %v4141_v51, %s3951_s21 }
 0x23d   :  { %670 = vrot.lane.b32.xlu0 %v4136_v50, %s3954_s23 }
 0x23e   :  { %626 = vrot.lane.b32.xlu1 %v4141_v51, %s3954_s23 }
 0x241   :  { %620 = vrot.lane.b32.xlu0 %v4131_v48, %s3951_s21 }
 0x242   :  { %676 = vrot.lane.b32.xlu1 %v4162_v57, %s3952_s22 }
 0x245   :  { %624 = vrot.lane.b32.xlu0 %v4131_v48, %s3954_s23 }
 0x246   :  { %682 = vrot.lane.b32.xlu1 %v4162_v57, %s3951_s21 }
 0x249   :  { %674 = vrot.lane.b32.xlu0 %v4172_v58, %s3952_s22 }
 0x24a   :  { %688 = vrot.lane.b32.xlu1 %v4162_v57, %s3954_s23 }
 0x24d   :  { %680 = vrot.lane.b32.xlu0 %v4172_v58, %s3951_s21 }
 0x24e   :  { %686 = vrot.lane.b32.xlu1 %v4172_v58, %s3954_s23 }
 0x251   :  { %694 = vrot.lane.b32.xlu0 %v4162_v57, %s3953_s4 }
 0x252   :  { %700 = vrot.lane.b32.xlu1 %v4162_v57, %s3955_s5 }
 0x255   :  { %692 = vrot.lane.b32.xlu0 %v4172_v58, %s3953_s4 }
 0x256   :  { %698 = vrot.lane.b32.xlu1 %v4172_v58, %s3955_s5 }
 0x259   :  { %706 = vrot.lane.b32.xlu0 %v4162_v57, %s3956_s7 }
 0x25a   :  { %712 = vrot.lane.b32.xlu1 %v4162_v57, %s3944_s14 }
 0x25d   :  { %704 = vrot.lane.b32.xlu0 %v4172_v58, %s3956_s7 }
 0x25e   :  { %710 = vrot.lane.b32.xlu1 %v4172_v58, %s3944_s14 }
 0x261   :  { %720 = vrot.lane.b32.xlu0 %v4199_v61, %s3952_s22 }
 0x262   :  { %718 = vrot.lane.b32.xlu1 %v4201_v62, %s3952_s22 }
 0x263   :  { %v591_v63 = vpop.permute.xlu0 %590  ;;  %v587_v0 = vpop.permute.xlu1 %586 }
 0x264   :  { %3467 = vmatprep.mubr.msk.f32.mxu1 %vm738_vm2, %v587_v0  ;;  %3474 = vmatprep.mubr.msk.f32.mxu0 %vm738_vm2, %v591_v63 }
 0x267   :  { %v595_v1 = vpop.permute.xlu1 %594  ;;  %v599_v2 = vpop.permute.xlu0 %598 }
 0x26b   :  { %v603_v3 = vpop.permute.xlu1 %602  ;;  %v593_v5 = vpop.permute.xlu0 %592 }
 0x26f   :  { %v589_v4 = vpop.permute.xlu1 %588  ;;  %v601_v7 = vpop.permute.xlu0 %600 }
 0x273   :  { %v597_v6 = vpop.permute.xlu1 %596 }
 0x277   :  { %v605_v8 = vpop.permute.xlu1 %604 }
 0x27b   :  { %v631_v9 = vpop.permute.xlu0 %630  ;;  %v639_v10 = vpop.permute.xlu1 %638 }
 0x27f   :  { %v635_v11 = vpop.permute.xlu0 %634 }
 0x280   :  { %v647_v12 = vpop.permute.xlu1 %646 }
 0x283   :  { %v643_v13 = vpop.permute.xlu0 %642 }
 0x284   :  { %v637_v14 = vpop.permute.xlu1 %636 }
 0x285   :  { %3470 = vmatprep.subr.msk.mxu0 %vm738_vm2, %v637_v14 }
 0x286   :  { %3471 = vmatpush3.xpose.msk.msra.mxu0 %vm738_vm2, %v637_v14 }
 0x287   :  { %v633_v15 = vpop.permute.xlu0 %632  ;;  %3472 = vmatprep.subr.msk.mxu0 %vm738_vm2, %v635_v11 }
 0x288   :  { %3463 = vmatprep.subr.msk.mxu1 %vm738_vm2, %v633_v15  ;;  %v655_v16 = vpop.permute.xlu1 %654 }
 0x289   :  { %3464 = vmatpush3.xpose.msk.msra.mxu1 %vm738_vm2, %v633_v15 }
 0x28a   :  { %3465 = vmatprep.subr.msk.mxu1 %vm738_vm2, %v631_v9  ;;  %3473 = vmatpush3.xpose.msk.msra.mxu0 %vm738_vm2, %v635_v11 }
 0x28b   :  { %v651_v17 = vpop.permute.xlu0 %650 }
 0x28c   :  { %v645_v18 = vpop.permute.xlu1 %644 }
 0x28d   :  { %3466 = vmatpush3.xpose.msk.msra.mxu1 %vm738_vm2, %v631_v9  ;;  %3475 = vmatmul.mubr.msk.f32.vlgmr.msra.gmra.mxu0 %vm738_vm2, %v593_v5 }
 0x28e   :  { %3484 = vmatprep.subr.msk.mxu0 %vm738_vm2, %v645_v18  ;;  %3488 = vmatprep.mubr.msk.f32.mxu0 %vm738_vm2, %v599_v2 }
 0x28f   :  { %3485 = vmatpush3.xpose.msk.msra.mxu0 %vm738_vm2, %v645_v18  ;;  %v641_v19 = vpop.permute.xlu0 %640 }
 0x290   :  { %3486 = vmatprep.subr.msk.mxu0 %vm738_vm2, %v643_v13  ;;  %3468 = vmatmul.mubr.msk.f32.vlgmr.msra.gmra.mxu1 %vm738_vm2, %v589_v4  ;;  %v609_v20 = vpop.permute.xlu1 %608 }
 0x291   :  { %3477 = vmatprep.subr.msk.mxu1 %vm738_vm2, %v641_v19  ;;  %3481 = vmatprep.mubr.msk.f32.mxu1 %vm738_vm2, %v595_v1 }
 0x292   :  { %3478 = vmatpush3.xpose.msk.msra.mxu1 %vm738_vm2, %v641_v19 }
 0x293   :  { %3479 = vmatprep.subr.msk.mxu1 %vm738_vm2, %v639_v10  ;;  %3487 = vmatpush3.xpose.msk.msra.mxu0 %vm738_vm2, %v643_v13  ;;  %v607_v21 = vpop.permute.xlu0 %606 }
 0x294   :  { %v653_v22 = vpop.permute.xlu1 %652 }
 0x295   :  { %3498 = vmatprep.subr.msk.mxu0 %vm738_vm2, %v653_v22 }
 0x296   :  { %3480 = vmatpush3.xpose.msk.msra.mxu1 %vm738_vm2, %v639_v10  ;;  %3489 = vmatmul.mubr.msk.f32.vlgmr.msra.gmra.mxu0 %vm738_vm2, %v601_v7 }
 0x297   :  { %3499 = vmatpush3.xpose.msk.msra.mxu0 %vm738_vm2, %v653_v22  ;;  %3502 = vmatprep.mubr.msk.f32.mxu0 %vm738_vm2, %v607_v21  ;;  %v649_v23 = vpop.permute.xlu0 %648 }
 0x298   :  { %3500 = vmatprep.subr.msk.mxu0 %vm738_vm2, %v651_v17  ;;  %3491 = vmatprep.subr.msk.mxu1 %vm738_vm2, %v649_v23  ;;  %v661_v24 = vpop.permute.xlu1 %660 }
 0x299   :  { %3482 = vmatmul.mubr.msk.f32.vlgmr.msra.gmra.mxu1 %vm738_vm2, %v597_v6 }
 0x29a   :  { %3492 = vmatpush3.xpose.msk.msra.mxu1 %vm738_vm2, %v649_v23  ;;  %3495 = vmatprep.mubr.msk.f32.mxu1 %vm738_vm2, %v603_v3 }
 0x29b   :  { %3493 = vmatprep.subr.msk.mxu1 %vm738_vm2, %v647_v12  ;;  %3501 = vmatpush3.xpose.msk.msra.mxu0 %vm738_vm2, %v651_v17  ;;  %v611_v25 = vpop.permute.xlu0 %610 }
 0x29c   :  { %3512 = vmatprep.subr.msk.mxu0 %vm738_vm2, %v4136_v50  ;;  %v617_v26 = vpop.permute.xlu1 %616 }
 0x29e   :  { %3494 = vmatpush3.xpose.msk.msra.mxu1 %vm738_vm2, %v647_v12  ;;  %3503 = vmatmul.mubr.msk.f32.vlgmr.msra.gmra.mxu0 %vm738_vm2, %v609_v20 }
 0x29f   :  { %3513 = vmatpush3.xpose.msk.msra.mxu0 %vm738_vm2, %v4136_v50  ;;  %3516 = vmatprep.mubr.msk.f32.mxu0 %vm738_vm2, %v4131_v48  ;;  %v657_v27 = vpop.permute.xlu0 %656  ;;  %v4293_v48 = vld [vmem:[#allocation5] sm:$0xff] }
 0x2a0   :  { %3514 = vmatprep.subr.msk.mxu0 %vm738_vm2, %v4126_v47  ;;  %3505 = vmatprep.subr.msk.mxu1 %vm738_vm2, %v657_v27  ;;  %v663_v29 = vpop.permute.xlu1 %662 }
 0x2a1   :  { %3496 = vmatmul.mubr.msk.f32.vlgmr.msra.gmra.mxu1 %vm738_vm2, %v605_v8 }
 0x2a2   :  { %3506 = vmatpush3.xpose.msk.msra.mxu1 %vm738_vm2, %v657_v27  ;;  %3509 = vmatprep.mubr.msk.f32.mxu1 %vm738_vm2, %v611_v25 }
 0x2a3   :  { %3507 = vmatprep.subr.msk.mxu1 %vm738_vm2, %v655_v16  ;;  %3515 = vmatpush3.xpose.msk.msra.mxu0 %vm738_vm2, %v4126_v47  ;;  %v613_v30 = vpop.permute.xlu0 %612 }
 0x2a4   :  { %v619_v31 = vpop.permute.xlu1 %618 }
 0x2a6   :  { %3508 = vmatpush3.xpose.msk.msra.mxu1 %vm738_vm2, %v655_v16  ;;  %3517 = vmatmul.mubr.msk.f32.vlgmr.msra.gmra.mxu0 %vm738_vm2, %v4141_v51 }
 0x2a7   :  { %3519 = vmatprep.subr.msk.mxu1 %vm738_vm2, %v663_v29  ;;  %v665_v32 = vpop.permute.xlu0 %664 }
 0x2a8   :  { %v669_v33 = vpop.permute.xlu1 %668 }
 0x2a9   :  { %3510 = vmatmul.mubr.msk.f32.vlgmr.msra.gmra.mxu1 %vm738_vm2, %v613_v30 }
 0x2aa   :  { %3520 = vmatpush3.xpose.msk.msra.mxu1 %vm738_vm2, %v663_v29  ;;  %3523 = vmatprep.mubr.msk.f32.mxu1 %vm738_vm2, %v617_v26 }
 0x2ab   :  { %3521 = vmatprep.subr.msk.mxu1 %vm738_vm2, %v661_v24  ;;  %v667_v34 = vpop.permute.xlu0 %666 }
 0x2ac   :  { %v623_v35 = vpop.permute.xlu1 %622  ;;  %3526 = vmatprep.subr.msk.mxu0 %vm738_vm2, %v667_v34 }
 0x2ad   :  { %3527 = vmatpush3.xpose.msk.msra.mxu0 %vm738_vm2, %v667_v34 }
 0x2ae   :  { %3522 = vmatpush3.xpose.msk.msra.mxu1 %vm738_vm2, %v661_v24  ;;  %3528 = vmatprep.subr.msk.mxu0 %vm738_vm2, %v665_v32 }
 0x2af   :  { %v671_v36 = vpop.permute.xlu0 %670 }
 0x2b0   :  { %3533 = vmatprep.subr.msk.mxu1 %vm738_vm2, %v671_v36  ;;  %v627_v37 = vpop.permute.xlu1 %626 }
 0x2b1   :  { %3524 = vmatmul.mubr.msk.f32.vlgmr.msra.gmra.mxu1 %vm738_vm2, %v619_v31  ;;  %3529 = vmatpush3.xpose.msk.msra.mxu0 %vm738_vm2, %v665_v32 }
 0x2b2   :  { %3534 = vmatpush3.xpose.msk.msra.mxu1 %vm738_vm2, %v671_v36  ;;  %3540 = vmatprep.subr.mxu0 %v4162_v57 }
 0x2b3   :  { %3535 = vmatprep.subr.msk.mxu1 %vm738_vm2, %v669_v33  ;;  %v621_v38 = vpop.permute.xlu0 %620 }
 0x2b4   :  { %v4275_v39 = vpop.permute.xlu1 %676  ;;  %3530 = vmatprep.mubr.msk.f32.mxu0 %vm738_vm2, %v621_v38 }
 0x2b5   :  { %3531 = vmatmul.mubr.msk.f32.vlgmr.msra.gmra.mxu0 %vm738_vm2, %v623_v35 }
 0x2b6   :  { %3536 = vmatpush3.xpose.msk.msra.mxu1 %vm738_vm2, %v669_v33  ;;  %3541 = vmatpush3.msra.mxu0 %v4162_v57 }
 0x2b7   :  { %3542 = vmatprep.subr.mxu0 %v4172_v58  ;;  %v625_v40 = vpop.permute.xlu0 %624 }
 0x2b8   :  { %3543 = vmatpush3.msra.mxu0 %v4172_v58  ;;  %3537 = vmatprep.mubr.msk.f32.mxu1 %vm738_vm2, %v625_v40  ;;  %v683_v41 = vpop.permute.xlu1 %682 }
 0x2b9   :  { %3547 = vmatprep.subr.mxu0 %v4275_v39  ;;  %3538 = vmatmul.mubr.msk.f32.vlgmr.msra.gmra.mxu1 %vm738_vm2, %v627_v37 }
 0x2ba   :  { %3554 = vmatprep.subr.mxu1 %v683_v41 }
 0x2bb   :  { %3555 = vmatpush3.msra.mxu1 %v683_v41  ;;  %v4286_v42 = vpop.permute.xlu0 %674 }
 0x2bc   :  { %v4381_v40 = vpop.permute.xlu1 %688 }
 0x2bf   :  { %v681_v43 = vpop.permute.xlu0 %680 }
 0x2c0   :  { %3556 = vmatprep.subr.mxu1 %v681_v43 }
 0x2c1   :  { %3557 = vmatpush3.msra.mxu1 %v681_v43 }
 0x2c3   :  { %v4288_v45 = vpop.permute.xlu0 %694 }
 0x2c4   :  { %3568 = vmatprep.subr.mxu1 %v4288_v45 }
 0x2d5   :  { %v3462_v47 = vpop.f32.mrf.mxu0 }
 0x2d6   :  { %v4296_v49 = vadd.f32 %v3462_v47, %v4291_v46 }
 0x2d7   :  { %v813_v50 = vpop.f32.mrf.mxu0 }
 0x2d8   :  { %v4299_v51 = vadd.f32 %v813_v50, %v4293_v48  ;;  %v1738_v52 = vsel %vm738_vm2, %v4296_v49, -inf }
 0x2d9   :  { %1739 = vmax.xlane.f32.xlu1 %v1738_v52 }
 0x2da   :  { %v1735_v53 = vsel %vm738_vm2, %v4299_v51, -inf }
 0x2db   :  { %1736 = vmax.xlane.f32.xlu0 %v1735_v53 }
 0x34d   :  { %v3476_v54 = vpop.f32.mrf.mxu0 }
 0x34e   :  { %v4314_v60 = vadd.f32 %v3476_v54, %v4291_v46 }
 0x34f   :  { %v979_v55 = vpop.f32.mrf.mxu0 }
 0x350   :  { %v4306_v56 = vadd.f32 %v979_v55, %v4293_v48  ;;  %v3469_v57 = vpop.f32.mrf.mxu1  ;;  %v1750_v3 = vsel %vm738_vm2, %v4314_v60, -inf }
 0x351   :  { %v4309_v58 = vadd.f32 %v3469_v57, %v4291_v46  ;;  %v4395_v57 = vpop.permute.xlu1 %686 }
 0x352   :  { %v1747_v59 = vsel %vm738_vm2, %v4306_v56, -inf  ;;  %v896_v0 = vpop.f32.mrf.mxu1 }
 0x353   :  { %1748 = vmax.xlane.f32.xlu1 %v1747_v59  ;;  %v1744_v63 = vsel %vm738_vm2, %v4309_v58, -inf  ;;  %v4319_v1 = vadd.f32 %v896_v0, %v4293_v48 }
 0x354   :  { %1745 = vmax.xlane.f32.xlu0 %v1744_v63 }
 0x355   :  { %v1741_v8 = vsel %vm738_vm2, %v4319_v1, -inf }
 0x356   :  { %v3490_v2 = vpop.f32.mrf.mxu0 }
 0x357   :  { %v4337_v12 = vadd.f32 %v3490_v2, %v4291_v46 }
 0x358   :  { %1751 = vmax.xlane.f32.xlu0 %v1750_v3  ;;  %v1145_v5 = vpop.f32.mrf.mxu0 }
 0x359   :  { %v3483_v4 = vpop.f32.mrf.mxu1  ;;  %v4332_v10 = vadd.f32 %v1145_v5, %v4293_v48  ;;  %v1762_v20 = vsel %vm738_vm2, %v4337_v12, -inf }
 0x35a   :  { %v4324_v6 = vadd.f32 %v3483_v4, %v4291_v46 }
 0x35b   :  { %v1062_v7 = vpop.f32.mrf.mxu1  ;;  %v1759_v16 = vsel %vm738_vm2, %v4332_v10, -inf }
 0x35c   :  { %v4329_v9 = vadd.f32 %v1062_v7, %v4293_v48  ;;  %1742 = vmax.xlane.f32.xlu0 %v1741_v8  ;;  %v1756_v14 = vsel %vm738_vm2, %v4324_v6, -inf }
 0x35e   :  { %v1753_v11 = vsel %vm738_vm2, %v4329_v9, -inf  ;;  %v3504_v13 = vpop.f32.mrf.mxu0 }
 0x35f   :  { %1754 = vmax.xlane.f32.xlu1 %v1753_v11  ;;  %v4357_v24 = vadd.f32 %v3504_v13, %v4291_v46  ;;  %v4415_v13 = vpop.permute.xlu1 %700 }
 0x360   :  { %1757 = vmax.xlane.f32.xlu0 %v1756_v14  ;;  %v1311_v17 = vpop.f32.mrf.mxu0 }
 0x361   :  { %v3497_v15 = vpop.f32.mrf.mxu1  ;;  %v4352_v22 = vadd.f32 %v1311_v17, %v4293_v48  ;;  %v1774_v33 = vsel %vm738_vm2, %v4357_v24, -inf }
 0x362   :  { %v4344_v18 = vadd.f32 %v3497_v15, %v4291_v46 }
 0x363   :  { %v1228_v19 = vpop.f32.mrf.mxu1  ;;  %1760 = vmax.xlane.f32.xlu1 %v1759_v16  ;;  %v1771_v29 = vsel %vm738_vm2, %v4352_v22, -inf  ;;  %v4423_v16 = vpop.permute.xlu1 %698 }
 0x364   :  { %v4349_v21 = vadd.f32 %v1228_v19, %v4293_v48  ;;  %1763 = vmax.xlane.f32.xlu0 %v1762_v20  ;;  %v1768_v26 = vsel %vm738_vm2, %v4344_v18, -inf }
 0x366   :  { %v1765_v23 = vsel %vm738_vm2, %v4349_v21, -inf  ;;  %v3518_v25 = vpop.f32.mrf.mxu0 }
 0x367   :  { %1766 = vmax.xlane.f32.xlu1 %v1765_v23  ;;  %v4377_v37 = vadd.f32 %v3518_v25, %v4291_v46  ;;  %v4427_v19 = vpop.permute.xlu1 %712 }
 0x368   :  { %1769 = vmax.xlane.f32.xlu0 %v1768_v26  ;;  %v1477_v30 = vpop.f32.mrf.mxu0 }
 0x369   :  { %v3511_v27 = vpop.f32.mrf.mxu1  ;;  %v4372_v35 = vadd.f32 %v1477_v30, %v4293_v48  ;;  %v1786_v52 = vsel %vm738_vm2, %v4377_v37, -inf }
 0x36a   :  { %v4364_v31 = vadd.f32 %v3511_v27, %v4291_v46 }
 0x36b   :  { %v1394_v32 = vpop.f32.mrf.mxu1  ;;  %1772 = vmax.xlane.f32.xlu1 %v1771_v29  ;;  %v1783_v43 = vsel %vm738_vm2, %v4372_v35, -inf  ;;  %v4431_v20 = vpop.permute.xlu1 %710 }
 0x36c   :  { %v4369_v34 = vadd.f32 %v1394_v32, %v4293_v48  ;;  %1775 = vmax.xlane.f32.xlu0 %v1774_v33  ;;  %v1780_v38 = vsel %vm738_vm2, %v4364_v31, -inf }
 0x36e   :  { %v1777_v36 = vsel %vm738_vm2, %v4369_v34, -inf }
 0x36f   :  { %1778 = vmax.xlane.f32.xlu1 %v1777_v36  ;;  %v4437_v25 = vpop.permute.xlu1 %718 }
 0x370   :  { %1781 = vmax.xlane.f32.xlu0 %v1780_v38 }
 0x371   :  { %v3525_v41 = vpop.f32.mrf.mxu1 }
 0x372   :  { %v4386_v47 = vadd.f32 %v3525_v41, %v4291_v46 }
 0x373   :  { %v1560_v50 = vpop.f32.mrf.mxu1  ;;  %1784 = vmax.xlane.f32.xlu1 %v1783_v43  ;;  %v1740_v27 = vpop.xlane.xlu1 %1739 }
 0x374   :  { %v4391_v53 = vadd.f32 %v1560_v50, %v4293_v48  ;;  %1787 = vmax.xlane.f32.xlu0 %v1786_v52  ;;  %v1792_v0 = vsel %vm738_vm2, %v4386_v47, -inf  ;;  %v1808_v30 = vsub.f32 %v4296_v49, %v1740_v27 }
 0x375   :  { %v3532_v54 = vpop.f32.mrf.mxu0 }
 0x376   :  { %v1789_v55 = vsel %vm738_vm2, %v4391_v53, -inf  ;;  %v4398_v59 = vadd.f32 %v3532_v54, %v4291_v46  ;;  %v1833_v33 = vmul.f32 1.442695, %v1808_v30 }
 0x377   :  { %1790 = vmax.xlane.f32.xlu1 %v1789_v55  ;;  %v1643_v63 = vpop.f32.mrf.mxu0 }
 0x378   :  { %v4403_v2 = vadd.f32 %v1643_v63, %v4293_v48  ;;  %1793 = vmax.xlane.f32.xlu0 %v1792_v0  ;;  %v1798_v8 = vsel %vm738_vm2, %v4398_v59, -inf }
 0x379   :  { %v3539_v3 = vpop.f32.mrf.mxu1 }
 0x37a   :  { %v1795_v4 = vsel %vm738_vm2, %v4403_v2, -inf  ;;  %v4408_v5 = vadd.f32 %v3539_v3, %v4291_v46  ;;  %v4421_v46 = vpop.permute.xlu0 %692 }
 0x37b   :  { %v1726_v7 = vpop.f32.mrf.mxu1  ;;  %1796 = vmax.xlane.f32.xlu1 %v1795_v4 }
 0x37c   :  { %v4413_v11 = vadd.f32 %v1726_v7, %v4293_v48  ;;  %1799 = vmax.xlane.f32.xlu0 %v1798_v8  ;;  %v1804_v15 = vsel %vm738_vm2, %v4408_v5, -inf }
 0x37e   :  { %v1801_v14 = vsel %vm738_vm2, %v4413_v11, -inf  ;;  %v4425_v17 = vpop.permute.xlu0 %706 }
 0x37f   :  { %1802 = vmax.xlane.f32.xlu1 %v1801_v14 }
 0x380   :  { %1805 = vmax.xlane.f32.xlu0 %v1804_v15 }
 0x382   :  { %v4429_v48 = vpop.permute.xlu0 %704 }
 0x386   :  { %v4435_v23 = vpop.permute.xlu0 %720 }
 0x38a   :  { %v1737_v26 = vpop.xlane.xlu0 %1736 }
 0x38b   :  { %v1807_v29 = vsub.f32 %v4299_v51, %v1737_v26 }
 0x38d   :  { %v1831_v32 = vmul.f32 1.442695, %v1807_v29 }
 0x38f   :  { %3673 = vpow2.f32 %v1831_v32 }
 0x390   :  { %732 = vrot.lane.b32.xlu1 %v4199_v61, %s3954_s23  ;;  %3675 = vpow2.f32 %v1833_v33 }
 0x396   :  { %726 = vrot.lane.b32.xlu0 %v4199_v61, %s3951_s21 }
 0x39c   :  { %v4443_v36 = vpop.eup %3673 }
 0x39d   :  { %v4445_v38 = vpop.eup %3675  ;;  %v1879_v41 = vsel %vm738_vm2, %v4443_v36, 0.0 }
 0x39e   :  { %v1882_v43 = vsel %vm738_vm2, %v4445_v38, 0.0 }
 0x3b4   :  { %1880 = vadd.xlane.f32.xlu1 %v1879_v41 }
 0x3b5   :  { %1883 = vadd.xlane.f32.xlu0 %v1882_v43 }
 0x3dc   :  { %v1749_v52 = vpop.xlane.xlu1 %1748 }
 0x3dd   :  { %v1746_v50 = vpop.xlane.xlu0 %1745  ;;  %v1811_v63 = vsub.f32 %v4306_v56, %v1749_v52 }
 0x3de   :  { %v1810_v51 = vsub.f32 %v4309_v58, %v1746_v50 }
 0x3df   :  { %v1839_v7 = vmul.f32 1.442695, %v1811_v63 }
 0x3e0   :  { %v1837_v49 = vmul.f32 1.442695, %v1810_v51 }
 0x3e1   :  { %v1752_v54 = vpop.xlane.xlu0 %1751 }
 0x3e2   :  { %3677 = vpow2.f32 %v1837_v49  ;;  %v1812_v55 = vsub.f32 %v4314_v60, %v1752_v54 }
 0x3e4   :  { %v1841_v0 = vmul.f32 1.442695, %v1812_v55 }
 0x3e5   :  { %v1743_v3 = vpop.xlane.xlu0 %1742 }
 0x3e6   :  { %3679 = vpow2.f32 %v1841_v0  ;;  %v1809_v4 = vsub.f32 %v4319_v1, %v1743_v3 }
 0x3e8   :  { %v1835_v8 = vmul.f32 1.442695, %v1809_v4  ;;  %v1755_v14 = vpop.xlane.xlu1 %1754 }
 0x3e9   :  { %v1813_v15 = vsub.f32 %v4329_v9, %v1755_v14  ;;  %v1758_v26 = vpop.xlane.xlu0 %1757 }
 0x3ea   :  { %3681 = vpow2.f32 %v1835_v8  ;;  %v1814_v58 = vsub.f32 %v4324_v6, %v1758_v26 }
 0x3eb   :  { %v1843_v27 = vmul.f32 1.442695, %v1813_v15  ;;  %3683 = vpow2.f32 %v1839_v7 }
 0x3ec   :  { %v1845_v29 = vmul.f32 1.442695, %v1814_v58  ;;  %v1761_v60 = vpop.xlane.xlu1 %1760 }
 0x3ed   :  { %v1815_v56 = vsub.f32 %v4332_v10, %v1761_v60  ;;  %v1764_v30 = vpop.xlane.xlu0 %1763 }
 0x3ee   :  { %3685 = vpow2.f32 %v1845_v29  ;;  %v1816_v32 = vsub.f32 %v4337_v12, %v1764_v30 }
 0x3ef   :  { %v4459_v1 = vpop.eup %3677  ;;  %3687 = vpow2.f32 %v1843_v27  ;;  %v1847_v33 = vmul.f32 1.442695, %v1815_v56 }
 0x3f0   :  { %v1849_v41 = vmul.f32 1.442695, %v1816_v32  ;;  %v1767_v9 = vpop.xlane.xlu1 %1766  ;;  %v1888_v43 = vsel %vm738_vm2, %v4459_v1, 0.0 }
 0x3f1   :  { %v1817_v6 = vsub.f32 %v4349_v21, %v1767_v9  ;;  %1889 = vadd.xlane.f32.xlu0 %v1888_v43  ;;  %v1770_v50 = vpop.xlane.xlu0 %1769 }
 0x3f2   :  { %3689 = vpow2.f32 %v1849_v41  ;;  %v1818_v10 = vsub.f32 %v4344_v18, %v1770_v50 }
 0x3f3   :  { %v4465_v51 = vpop.eup %3679  ;;  %3691 = vpow2.f32 %v1847_v33  ;;  %v1851_v12 = vmul.f32 1.442695, %v1817_v6 }
 0x3f4   :  { %v1853_v49 = vmul.f32 1.442695, %v1818_v10  ;;  %v1773_v52 = vpop.xlane.xlu1 %1772  ;;  %v1894_v54 = vsel %vm738_vm2, %v4465_v51, 0.0 }
 0x3f5   :  { %v1819_v55 = vsub.f32 %v4352_v22, %v1773_v52  ;;  %1895 = vadd.xlane.f32.xlu0 %v1894_v54  ;;  %v1776_v63 = vpop.xlane.xlu0 %1775 }
 0x3f6   :  { %3693 = vpow2.f32 %v1853_v49  ;;  %v1820_v21 = vsub.f32 %v4357_v24, %v1776_v63 }
 0x3f7   :  { %v4471_v0 = vpop.eup %3681  ;;  %3695 = vpow2.f32 %v1851_v12  ;;  %v1855_v18 = vmul.f32 1.442695, %v1819_v55 }
 0x3f8   :  { %v1857_v3 = vmul.f32 1.442695, %v1820_v21  ;;  %v1779_v4 = vpop.xlane.xlu1 %1778  ;;  %v1885_v7 = vsel %vm738_vm2, %v4471_v0, 0.0  ;;  %v4475_v8 = vpop.eup %3683 }
 0x3f9   :  { %v1821_v14 = vsub.f32 %v4369_v34, %v1779_v4  ;;  %1886 = vadd.xlane.f32.xlu1 %v1885_v7  ;;  %v1782_v22 = vpop.xlane.xlu0 %1781  ;;  %v1891_v60 = vsel %vm738_vm2, %v4475_v8, 0.0 }
 0x3fa   :  { %3697 = vpow2.f32 %v1857_v3  ;;  %v1822_v15 = vsub.f32 %v4364_v31, %v1782_v22 }
 0x3fb   :  { %v4479_v26 = vpop.eup %3685  ;;  %3699 = vpow2.f32 %v1855_v18  ;;  %v1859_v58 = vmul.f32 1.442695, %v1821_v14 }
 0x3fc   :  { %v4481_v24 = vpop.eup %3687  ;;  %v1861_v27 = vmul.f32 1.442695, %v1822_v15  ;;  %v1785_v29 = vpop.xlane.xlu1 %1784  ;;  %v1900_v56 = vsel %vm738_vm2, %v4479_v26, 0.0 }
 0x3fd   :  { %v1823_v34 = vsub.f32 %v4372_v35, %v1785_v29  ;;  %1892 = vadd.xlane.f32.xlu1 %v1891_v60  ;;  %1901 = vadd.xlane.f32.xlu0 %v1900_v56  ;;  %v1788_v30 = vpop.xlane.xlu0 %1787  ;;  %v1897_v33 = vsel %vm738_vm2, %v4481_v24, 0.0 }
 0x3fe   :  { %3701 = vpow2.f32 %v1861_v27  ;;  %v1824_v31 = vsub.f32 %v4377_v37, %v1788_v30 }
 0x3ff   :  { %v4489_v32 = vpop.eup %3689  ;;  %3703 = vpow2.f32 %v1859_v58  ;;  %v1863_v9 = vmul.f32 1.442695, %v1823_v34 }
 0x400   :  { %v4493_v41 = vpop.eup %3691  ;;  %v1865_v43 = vmul.f32 1.442695, %v1824_v31  ;;  %v1791_v6 = vpop.xlane.xlu1 %1790  ;;  %v1906_v35 = vsel %vm738_vm2, %v4489_v32, 0.0 }
 0x401   :  { %v1825_v50 = vsub.f32 %v4391_v53, %v1791_v6  ;;  %1898 = vadd.xlane.f32.xlu1 %v1897_v33  ;;  %1907 = vadd.xlane.f32.xlu0 %v1906_v35  ;;  %v1794_v10 = vpop.xlane.xlu0 %1793  ;;  %v1903_v49 = vsel %vm738_vm2, %v4493_v41, 0.0 }
 0x402   :  { %3705 = vpow2.f32 %v1865_v43  ;;  %v1826_v37 = vsub.f32 %v4386_v47, %v1794_v10 }
 0x403   :  { %v4499_v12 = vpop.eup %3693  ;;  %3707 = vpow2.f32 %v1863_v9  ;;  %v1867_v54 = vmul.f32 1.442695, %v1825_v50 }
 0x404   :  { %v4503_v52 = vpop.eup %3695  ;;  %v1869_v55 = vmul.f32 1.442695, %v1826_v37  ;;  %v1797_v63 = vpop.xlane.xlu1 %1796  ;;  %v1912_v53 = vsel %vm738_vm2, %v4499_v12, 0.0 }
 0x405   :  { %v1827_v21 = vsub.f32 %v4403_v2, %v1797_v63  ;;  %1904 = vadd.xlane.f32.xlu1 %v1903_v49  ;;  %1913 = vadd.xlane.f32.xlu0 %v1912_v53  ;;  %v1800_v18 = vpop.xlane.xlu0 %1799  ;;  %v1909_v4 = vsel %vm738_vm2, %v4503_v52, 0.0 }
 0x406   :  { %3709 = vpow2.f32 %v1869_v55  ;;  %v1828_v47 = vsub.f32 %v4398_v59, %v1800_v18 }
 0x407   :  { %v4509_v3 = vpop.eup %3697  ;;  %3711 = vpow2.f32 %v1867_v54  ;;  %v1871_v14 = vmul.f32 1.442695, %v1827_v21 }
 0x408   :  { %v4513_v7 = vpop.eup %3699  ;;  %v1873_v22 = vmul.f32 1.442695, %v1828_v47  ;;  %v1803_v15 = vpop.xlane.xlu1 %1802  ;;  %v1918_v2 = vsel %vm738_vm2, %v4509_v3, 0.0 }
 0x409   :  { %v1829_v58 = vsub.f32 %v4413_v11, %v1803_v15  ;;  %1910 = vadd.xlane.f32.xlu1 %v1909_v4  ;;  %1919 = vadd.xlane.f32.xlu0 %v1918_v2  ;;  %v1806_v27 = vpop.xlane.xlu0 %1805  ;;  %v1915_v60 = vsel %vm738_vm2, %v4513_v7, 0.0 }
 0x40a   :  { %3713 = vpow2.f32 %v1873_v22  ;;  %v1830_v59 = vsub.f32 %v4408_v5, %v1806_v27 }
 0x40b   :  { %v4519_v29 = vpop.eup %3701  ;;  %3715 = vpow2.f32 %v1871_v14  ;;  %v1875_v56 = vmul.f32 1.442695, %v1829_v58 }
 0x40c   :  { %v1877_v34 = vmul.f32 1.442695, %v1830_v59  ;;  %v1924_v30 = vsel %vm738_vm2, %v4519_v29, 0.0  ;;  %v4525_v31 = vpop.eup %3703  ;;  %v4565_v47 = vpop.permute.xlu1 %732 }
 0x40d   :  { %1916 = vadd.xlane.f32.xlu1 %v1915_v60  ;;  %1925 = vadd.xlane.f32.xlu0 %v1924_v30  ;;  %v1921_v5 = vsel %vm738_vm2, %v4525_v31, 0.0  ;;  %v4567_v4 = vpop.permute.xlu0 %726 }
 0x40e   :  { %3717 = vpow2.f32 %v1877_v34 }
 0x40f   :  { %v4527_v11 = vpop.eup %3705  ;;  %3719 = vpow2.f32 %v1875_v56 }
 0x410   :  { %v1930_v33 = vsel %vm738_vm2, %v4527_v11, 0.0  ;;  %v4533_v9 = vpop.eup %3707 }
 0x411   :  { %1922 = vadd.xlane.f32.xlu1 %v1921_v5  ;;  %1931 = vadd.xlane.f32.xlu0 %v1930_v33  ;;  %v1927_v6 = vsel %vm738_vm2, %v4533_v9, 0.0 }
 0x413   :  { %v4535_v43 = vpop.eup %3709 }
 0x414   :  { %v1936_v35 = vsel %vm738_vm2, %v4535_v43, 0.0  ;;  %v4541_v50 = vpop.eup %3711 }
 0x415   :  { %1928 = vadd.xlane.f32.xlu1 %v1927_v6  ;;  %1937 = vadd.xlane.f32.xlu0 %v1936_v35  ;;  %v1933_v37 = vsel %vm738_vm2, %v4541_v50, 0.0 }
 0x417   :  { %v4543_v10 = vpop.eup %3713 }
 0x418   :  { %v1942_v49 = vsel %vm738_vm2, %v4543_v10, 0.0  ;;  %v4549_v54 = vpop.eup %3715 }
 0x419   :  { %1934 = vadd.xlane.f32.xlu1 %v1933_v37  ;;  %1943 = vadd.xlane.f32.xlu0 %v1942_v49  ;;  %v1939_v63 = vsel %vm738_vm2, %v4549_v54, 0.0 }
 0x41b   :  { %v4551_v55 = vpop.eup %3717 }
 0x41c   :  { %v1948_v53 = vsel %vm738_vm2, %v4551_v55, 0.0  ;;  %v4557_v21 = vpop.eup %3719 }
 0x41d   :  { %1940 = vadd.xlane.f32.xlu1 %v1939_v63  ;;  %1949 = vadd.xlane.f32.xlu0 %v1948_v53  ;;  %v1945_v18 = vsel %vm738_vm2, %v4557_v21, 0.0 }
 0x421   :  { %1946 = vadd.xlane.f32.xlu1 %v1945_v18 }
 0x432   :  { %730 = vrot.lane.b32.xlu1 %v4201_v62, %s3954_s23 }
 0x433   :  { %724 = vrot.lane.b32.xlu0 %v4201_v62, %s3951_s21 }
 0x43d   :  { %v1881_v14 = vpop.xlane.xlu1 %1880 }
 0x43e   :  { %3721 = vrcp.f32 %v1881_v14  ;;  %v1884_v22 = vpop.xlane.xlu0 %1883 }
 0x43f   :  { %3723 = vrcp.f32 %v1884_v22 }
 0x44b   :  { %v3722_v15 = vpop.eup %3721 }
 0x44c   :  { %v3724_v2 = vpop.eup %3723  ;;  %v1952_v58 = vmul.f32 %v3722_v15, %v4443_v36 }
 0x44d   :  { %v1954_v27 = vmul.f32 %v3724_v2, %v4445_v38 }
 0x44e   :  { %3544 = vmatprep.mubr.msk.f32.mxu0 %vm738_vm2, %v1952_v58 }
 0x44f   :  { %3545 = vmatmul.mubr.msk.f32.vlgmr.msra.gmra.mxu0 %vm738_vm2, %v1954_v27 }
 0x450   :  { %3548 = vmatpush3.msra.mxu0 %v4275_v39 }
 0x451   :  { %3549 = vmatprep.subr.mxu0 %v4286_v42 }
 0x452   :  { %3550 = vmatpush3.msra.mxu0 %v4286_v42 }
 0x453   :  { %3561 = vmatprep.subr.mxu0 %v4381_v40 }
 0x47a   :  { %v1890_v59 = vpop.xlane.xlu0 %1889 }
 0x47b   :  { %3725 = vrcp.f32 %v1890_v59 }
 0x47e   :  { %v1896_v60 = vpop.xlane.xlu0 %1895 }
 0x482   :  { %v1887_v56 = vpop.xlane.xlu1 %1886 }
 0x483   :  { %3727 = vrcp.f32 %v1887_v56 }
 0x484   :  { %3729 = vrcp.f32 %v1896_v60 }
 0x486   :  { %v1893_v36 = vpop.xlane.xlu1 %1892  ;;  %v1902_v38 = vpop.xlane.xlu0 %1901 }
 0x487   :  { %3731 = vrcp.f32 %v1893_v36 }
 0x488   :  { %3733 = vrcp.f32 %v1902_v38  ;;  %v3726_v33 = vpop.eup %3725 }
 0x489   :  { %v1958_v49 = vmul.f32 %v3726_v33, %v4459_v1 }
 0x48a   :  { %v1899_v34 = vpop.xlane.xlu1 %1898  ;;  %v1908_v30 = vpop.xlane.xlu0 %1907 }
 0x48b   :  { %3735 = vrcp.f32 %v1899_v34 }
 0x48c   :  { %3737 = vrcp.f32 %v1908_v30 }
 0x48e   :  { %v1905_v39 = vpop.xlane.xlu1 %1904  ;;  %v1914_v5 = vpop.xlane.xlu0 %1913 }
 0x48f   :  { %3739 = vrcp.f32 %v1905_v39 }
 0x490   :  { %v3728_v42 = vpop.eup %3727  ;;  %3741 = vrcp.f32 %v1914_v5 }
 0x491   :  { %v1956_v6 = vmul.f32 %v3728_v42, %v4471_v0  ;;  %v3730_v63 = vpop.eup %3729 }
 0x492   :  { %v1911_v35 = vpop.xlane.xlu1 %1910  ;;  %v1920_v37 = vpop.xlane.xlu0 %1919  ;;  %v1962_v22 = vmul.f32 %v3730_v63, %v4465_v51  ;;  %v3098_v63 = vld [vmem:[#allocation13 + $0xb8] sm:$0xff] }
 0x493   :  { %3743 = vrcp.f32 %v1911_v35  ;;  %3551 = vmatprep.mubr.msk.f32.mxu0 %vm738_vm2, %v1956_v6  ;;  %v3104_v6 = vld [vmem:[#allocation13 + $0xe8] sm:$0xff]  ;;  %v3102_v35 = vld [vmem:[#allocation13 + $0xd8] sm:$0xff] }
 0x494   :  { %v3732_v53 = vpop.eup %3731  ;;  %3552 = vmatmul.mubr.msk.f32.vlgmr.msra.gmra.mxu0 %vm738_vm2, %v1958_v49  ;;  %3745 = vrcp.f32 %v1920_v37  ;;  %v3101_v37 = vld [vmem:[#allocation13 + $0xd0] sm:$0xff]  ;;  %v3100_v49 = vld [vmem:[#allocation13 + $0xc8] sm:$0xff] }
 0x495   :  { %3562 = vmatpush3.msra.mxu0 %v4381_v40  ;;  %v1960_v18 = vmul.f32 %v3732_v53, %v4475_v8  ;;  %v3734_v15 = vpop.eup %3733  ;;  %v3097_v53 = vld [vmem:[#allocation13 + $0xb0] sm:$0xff] }
 0x496   :  { %3563 = vmatprep.subr.mxu0 %v4395_v57  ;;  %v1917_v0 = vpop.xlane.xlu1 %1916  ;;  %v1926_v14 = vpop.xlane.xlu0 %1925  ;;  %v1966_v2 = vmul.f32 %v3734_v15, %v4479_v26 }
 0x497   :  { %3747 = vrcp.f32 %v1917_v0  ;;  %3564 = vmatpush3.msra.mxu0 %v4395_v57  ;;  %3558 = vmatprep.mubr.msk.f32.mxu1 %vm738_vm2, %v1960_v18  ;;  %v3096_v18 = vld [vmem:[#allocation13 + $0xa8] sm:$0xff]  ;;  %v3095_v0 = vld [vmem:[#allocation13 + $0xa0] sm:$0xff] }
 0x498   :  { %v3736_v1 = vpop.eup %3735  ;;  %3575 = vmatprep.subr.mxu0 %v4415_v13  ;;  %3559 = vmatmul.mubr.msk.f32.vlgmr.msra.gmra.mxu1 %vm738_vm2, %v1962_v22  ;;  %3749 = vrcp.f32 %v1926_v14  ;;  %v3094_v14 = vld [vmem:[#allocation13 + $0x98] sm:$0xff]  ;;  %v3093_v22 = vld [vmem:[#allocation13 + $0x90] sm:$0xff] }
 0x499   :  { %3569 = vmatpush3.msra.mxu1 %v4288_v45  ;;  %v1964_v40 = vmul.f32 %v3736_v1, %v4481_v24  ;;  %v3738_v58 = vpop.eup %3737 }
 0x49a   :  { %3570 = vmatprep.subr.mxu1 %v4421_v46  ;;  %v1923_v8 = vpop.xlane.xlu1 %1922  ;;  %v1932_v51 = vpop.xlane.xlu0 %1931  ;;  %v1970_v27 = vmul.f32 %v3738_v58, %v4489_v32 }
 0x49b   :  { %3751 = vrcp.f32 %v1923_v8  ;;  %3571 = vmatpush3.msra.mxu1 %v4421_v46  ;;  %3565 = vmatprep.mubr.msk.f32.mxu0 %vm738_vm2, %v1964_v40  ;;  %v3092_v40 = vld [vmem:[#allocation13 + $0x88] sm:$0xff]  ;;  %v3091_v8 = vld [vmem:[#allocation13 + $0x80] sm:$0xff] }
 0x49c   :  { %v3740_v57 = vpop.eup %3739  ;;  %3582 = vmatprep.subr.mxu1 %v4425_v17  ;;  %3566 = vmatmul.mubr.msk.f32.vlgmr.msra.gmra.mxu0 %vm738_vm2, %v1966_v2  ;;  %3753 = vrcp.f32 %v1932_v51  ;;  %v3090_v51 = vld [vmem:[#allocation13 + $0x78] sm:$0xff] }
 0x49d   :  { %3576 = vmatpush3.msra.mxu0 %v4415_v13  ;;  %v1968_v45 = vmul.f32 %v3740_v57, %v4493_v41  ;;  %v3742_v59 = vpop.eup %3741  ;;  %v3089_v57 = vld [vmem:[#allocation13 + $0x70] sm:$0xff] }
 0x49e   :  { %3577 = vmatprep.subr.mxu0 %v4423_v16  ;;  %v1929_v24 = vpop.xlane.xlu1 %1928  ;;  %v1938_v26 = vpop.xlane.xlu0 %1937  ;;  %v1974_v60 = vmul.f32 %v3742_v59, %v4499_v12 }
 0x49f   :  { %3755 = vrcp.f32 %v1929_v24  ;;  %3578 = vmatpush3.msra.mxu0 %v4423_v16  ;;  %3572 = vmatprep.mubr.msk.f32.mxu1 %vm738_vm2, %v1968_v45  ;;  %v3088_v24 = vld [vmem:[#allocation13 + $0x68] sm:$0xff] }
 0x4a0   :  { %v3744_v46 = vpop.eup %3743  ;;  %3589 = vmatprep.subr.mxu0 %v4427_v19  ;;  %3573 = vmatmul.mubr.msk.f32.vlgmr.msra.gmra.mxu1 %vm738_vm2, %v1970_v27  ;;  %3757 = vrcp.f32 %v1938_v26  ;;  %v3087_v26 = vld [vmem:[#allocation13 + $0x60] sm:$0xff]  ;;  %v3086_v27 = vld [vmem:[#allocation13 + $0x58] sm:$0xff] }
 0x4a1   :  { %3583 = vmatpush3.msra.mxu1 %v4425_v17  ;;  %v1972_v13 = vmul.f32 %v3744_v46, %v4503_v52  ;;  %v3746_v56 = vpop.eup %3745 }
 0x4a2   :  { %3584 = vmatprep.subr.mxu1 %v4429_v48  ;;  %v1935_v41 = vpop.xlane.xlu1 %1934  ;;  %v1944_v32 = vpop.xlane.xlu0 %1943  ;;  %v1978_v12 = vmul.f32 %v3746_v56, %v4509_v3  ;;  %v3082_v56 = vld [vmem:[#allocation13 + $0x38] sm:$0xff] }
 0x4a3   :  { %3759 = vrcp.f32 %v1935_v41  ;;  %3585 = vmatpush3.msra.mxu1 %v4429_v48  ;;  %3579 = vmatprep.mubr.msk.f32.mxu0 %vm738_vm2, %v1972_v13  ;;  %v3085_v13 = vld [vmem:[#allocation13 + $0x50] sm:$0xff] }
 0x4a4   :  { %v3748_v16 = vpop.eup %3747  ;;  %3596 = vmatprep.subr.mxu1 %v4199_v61  ;;  %3580 = vmatmul.mubr.msk.f32.vlgmr.msra.gmra.mxu0 %vm738_vm2, %v1974_v60  ;;  %3761 = vrcp.f32 %v1944_v32  ;;  %v3084_v32 = vld [vmem:[#allocation13 + $0x48] sm:$0xff]  ;;  %v3083_v60 = vld [vmem:[#allocation13 + $0x40] sm:$0xff] }
 0x4a5   :  { %3590 = vmatpush3.msra.mxu0 %v4427_v19  ;;  %v1976_v17 = vmul.f32 %v3748_v16, %v4513_v7  ;;  %v3750_v36 = vpop.eup %3749 }
 0x4a6   :  { %3591 = vmatprep.subr.mxu0 %v4431_v20  ;;  %v1941_v52 = vpop.xlane.xlu1 %1940  ;;  %v1950_v48 = vpop.xlane.xlu0 %1949  ;;  %v1982_v7 = vmul.f32 %v3750_v36, %v4519_v29  ;;  %v3080_v36 = vld [vmem:[#allocation13 + $0x28] sm:$0xff] }
 0x4a7   :  { %3763 = vrcp.f32 %v1941_v52  ;;  %3592 = vmatpush3.msra.mxu0 %v4431_v20  ;;  %3586 = vmatprep.mubr.msk.f32.mxu1 %vm738_vm2, %v1976_v17  ;;  %v3081_v52 = vld [vmem:[#allocation13 + $0x30] sm:$0xff] }
 0x4a8   :  { %v3752_v38 = vpop.eup %3751  ;;  %3603 = vmatprep.subr.mxu0 %v4435_v23  ;;  %3587 = vmatmul.mubr.msk.f32.vlgmr.msra.gmra.mxu1 %vm738_vm2, %v1978_v12  ;;  %3765 = vrcp.f32 %v1950_v48  ;;  %v3079_v48 = vld [vmem:[#allocation13 + $0x20] sm:$0xff] }
 0x4a9   :  { %3597 = vmatpush3.msra.mxu1 %v4199_v61  ;;  %v1980_v19 = vmul.f32 %v3752_v38, %v4525_v31  ;;  %v3754_v34 = vpop.eup %3753  ;;  %v3078_v38 = vld [vmem:[#allocation13 + $0x18] sm:$0xff] }
 0x4aa   :  { %3598 = vmatprep.subr.mxu1 %v4201_v62  ;;  %v1947_v3 = vpop.xlane.xlu1 %1946  ;;  %v1986_v31 = vmul.f32 %v3754_v34, %v4527_v11  ;;  %v725_v30 = vpop.permute.xlu0 %724 }
 0x4ab   :  { %3767 = vrcp.f32 %v1947_v3  ;;  %3599 = vmatpush3.msra.mxu1 %v4201_v62  ;;  %3593 = vmatprep.mubr.msk.f32.mxu0 %vm738_vm2, %v1980_v19 }
 0x4ac   :  { %v3756_v20 = vpop.eup %3755  ;;  %3610 = vmatprep.subr.mxu1 %v4567_v4  ;;  %3594 = vmatmul.mubr.msk.f32.vlgmr.msra.gmra.mxu0 %vm738_vm2, %v1982_v7  ;;  %v3077_v7 = vld [vmem:[#allocation13 + $0x10] sm:$0xff] }
 0x4ad   :  { %3604 = vmatpush3.msra.mxu0 %v4435_v23  ;;  %v1984_v61 = vmul.f32 %v3756_v20, %v4533_v9  ;;  %v3758_v29 = vpop.eup %3757  ;;  %v3076_v20 = vld [vmem:[#allocation13 + $0x8] sm:$0xff] }
 0x4ae   :  { %3605 = vmatprep.subr.mxu0 %v4437_v25  ;;  %v1990_v9 = vmul.f32 %v3758_v29, %v4535_v43  ;;  %v731_v11 = vpop.permute.xlu1 %730  ;;  %v3121_v29 = vld [vmem:[#allocation13 + $0x170] sm:$0xff] }
 0x4af   :  { %3606 = vmatpush3.msra.mxu0 %v4437_v25  ;;  %3600 = vmatprep.mubr.msk.f32.mxu1 %vm738_vm2, %v1984_v61  ;;  %v3075_v61 = vld [vmem:[#allocation13] sm:$0xff] }
 0x4b0   :  { %v3760_v62 = vpop.eup %3759  ;;  %3617 = vmatprep.subr.mxu0 %v4565_v47  ;;  %3601 = vmatmul.mubr.msk.f32.vlgmr.msra.gmra.mxu1 %vm738_vm2, %v1986_v31  ;;  %v3122_v31 = vld [vmem:[#allocation13 + $0x178] sm:$0xff] }
 0x4b1   :  { %3611 = vmatpush3.msra.mxu1 %v4567_v4  ;;  %v1988_v23 = vmul.f32 %v3760_v62, %v4541_v50  ;;  %v3762_v39 = vpop.eup %3761 }
 0x4b2   :  { %3612 = vmatprep.subr.mxu1 %v725_v30  ;;  %v1994_v4 = vmul.f32 %v3762_v39, %v4543_v10  ;;  %v3103_v10 = vld [vmem:[#allocation13 + $0xe0] sm:$0xff] }
 0x4b3   :  { %3613 = vmatpush3.msra.mxu1 %v725_v30  ;;  %3607 = vmatprep.mubr.msk.f32.mxu0 %vm738_vm2, %v1988_v23  ;;  %v3119_v39 = vld [vmem:[#allocation13 + $0x160] sm:$0xff] }
 0x4b4   :  { %v3764_v25 = vpop.eup %3763  ;;  %3608 = vmatmul.mubr.msk.f32.vlgmr.msra.gmra.mxu0 %vm738_vm2, %v1990_v9  ;;  %v3120_v9 = vld [vmem:[#allocation13 + $0x168] sm:$0xff] }
 0x4b5   :  { %3618 = vmatpush3.msra.mxu0 %v4565_v47  ;;  %v1992_v5 = vmul.f32 %v3764_v25, %v4549_v54  ;;  %v3766_v33 = vpop.eup %3765  ;;  %v3106_v47 = vld [vmem:[#allocation13 + $0xf8] sm:$0xff]  ;;  %v3105_v54 = vld [vmem:[#allocation13 + $0xf0] sm:$0xff] }
 0x4b6   :  { %3619 = vmatprep.subr.mxu0 %v731_v11  ;;  %v1998_v42 = vmul.f32 %v3766_v33, %v4551_v55  ;;  %3141 = vmatprep.subr.mxu1 %v3106_v47  ;;  %v3118_v25 = vld [vmem:[#allocation13 + $0x158] sm:$0xff]  ;;  %v3113_v47 = vld [vmem:[#allocation13 + $0x130] sm:$0xff] }
 0x4b7   :  { %3620 = vmatpush3.msra.mxu0 %v731_v11  ;;  %3614 = vmatprep.mubr.msk.f32.mxu1 %vm738_vm2, %v1992_v5  ;;  %v3117_v11 = vld [vmem:[#allocation13 + $0x150] sm:$0xff] }
 0x4b8   :  { %v3768_v43 = vpop.eup %3767  ;;  %3615 = vmatmul.mubr.msk.f32.vlgmr.msra.gmra.mxu1 %vm738_vm2, %v1994_v4 }
 0x4b9   :  { %v1996_v50 = vmul.f32 %v3768_v43, %v4557_v21  ;;  %3142 = vmatpush1.msra.mxu1 %v3105_v54  ;;  %v3099_v21 = vld [vmem:[#allocation13 + $0xc0] sm:$0xff]  ;;  %v3116_v43 = vld [vmem:[#allocation13 + $0x148] sm:$0xff] }
 0x4ba   :  { %3143 = vmatprep.subr.mxu1 %v3104_v6  ;;  %v3112_v6 = vld [vmem:[#allocation13 + $0x128] sm:$0xff] }
 0x4bb   :  { %3621 = vmatprep.mubr.msk.f32.mxu0 %vm738_vm2, %v1996_v50  ;;  %3144 = vmatpush1.msra.mxu1 %v3103_v10  ;;  %v3115_v50 = vld [vmem:[#allocation13 + $0x140] sm:$0xff] }
 0x4bc   :  { %3622 = vmatmul.mubr.msk.f32.vlgmr.msra.gmra.mxu0 %vm738_vm2, %v1998_v42  ;;  %3145 = vmatprep.subr.mxu1 %v3102_v35  ;;  %v3114_v42 = vld [vmem:[#allocation13 + $0x138] sm:$0xff]  ;;  %v3111_v10 = vld [vmem:[#allocation13 + $0x120] sm:$0xff] }
 0x4bd   :  { %3146 = vmatpush1.msra.mxu1 %v3101_v37  ;;  %v3110_v35 = vld [vmem:[#allocation13 + $0x118] sm:$0xff]  ;;  %v3109_v37 = vld [vmem:[#allocation13 + $0x110] sm:$0xff] }
 0x4be   :  { %3147 = vmatprep.subr.mxu1 %v3100_v49 }
 0x4bf   :  { %3148 = vmatpush1.msra.mxu1 %v3099_v21 }
 0x4c0   :  { %3149 = vmatprep.subr.mxu1 %v3098_v63  ;;  %v3108_v63 = vld [vmem:[#allocation13 + $0x108] sm:$0xff] }
 0x4c1   :  { %3150 = vmatpush1.msra.mxu1 %v3097_v53  ;;  %v3107_v53 = vld [vmem:[#allocation13 + $0x100] sm:$0xff] }
 0x4c2   :  { %3151 = vmatprep.subr.mxu1 %v3096_v18 }
 0x4c3   :  { %3152 = vmatpush1.msra.mxu1 %v3095_v0 }
 0x4c4   :  { %3153 = vmatprep.subr.mxu1 %v3094_v14 }
 0x4c5   :  { %3154 = vmatpush1.msra.mxu1 %v3093_v22 }
 0x4c6   :  { %3155 = vmatprep.subr.mxu1 %v3092_v40 }
 0x4c7   :  { %3156 = vmatpush1.msra.mxu1 %v3091_v8 }
 0x4c8   :  { %3157 = vmatprep.subr.mxu1 %v3090_v51 }
 0x4c9   :  { %3158 = vmatpush1.msra.mxu1 %v3089_v57 }
 0x4ca   :  { %3159 = vmatprep.subr.mxu1 %v3088_v24 }
 0x4cb   :  { %3160 = vmatpush1.msra.mxu1 %v3087_v26 }
 0x4cc   :  { %3161 = vmatprep.subr.mxu1 %v3086_v27 }
 0x4cd   :  { %3162 = vmatpush1.msra.mxu1 %v3085_v13 }
 0x4ce   :  { %3163 = vmatprep.subr.mxu1 %v3084_v32 }
 0x4cf   :  { %3164 = vmatpush1.msra.mxu1 %v3083_v60 }
 0x4d0   :  { %3165 = vmatprep.subr.mxu1 %v3082_v56 }
 0x4d1   :  { %3166 = vmatpush1.msra.mxu1 %v3081_v52 }
 0x4d2   :  { %3167 = vmatprep.subr.mxu1 %v3080_v36 }
 0x4d3   :  { %3168 = vmatpush1.msra.mxu1 %v3079_v48 }
 0x4d4   :  { %3169 = vmatprep.subr.mxu1 %v3078_v38 }
 0x4d5   :  { %3170 = vmatpush1.msra.mxu1 %v3077_v7 }
 0x4d6   :  { %3171 = vmatprep.subr.mxu1 %v3076_v20 }
 0x4d7   :  { %3172 = vmatpush1.msra.mxu1 %v3075_v61 }
 0x4d8   :  { %3189 = vmatprep.subr.mxu1 %v3122_v31 }
 0x4d9   :  { %3190 = vmatpush2.msra.mxu1 %v3121_v29 }
 0x4da   :  { %3191 = vmatprep.subr.mxu1 %v3120_v9 }
 0x4db   :  { %3192 = vmatpush2.msra.mxu1 %v3119_v39 }
 0x4dc   :  { %3193 = vmatprep.subr.mxu1 %v3118_v25 }
 0x4dd   :  { %3194 = vmatpush2.msra.mxu1 %v3117_v11 }
 0x4de   :  { %3195 = vmatprep.subr.mxu1 %v3116_v43 }
 0x4df   :  { %3196 = vmatpush2.msra.mxu1 %v3115_v50 }
 0x4e0   :  { %3197 = vmatprep.subr.mxu1 %v3114_v42 }
 0x4e1   :  { %3198 = vmatpush2.msra.mxu1 %v3113_v47  ;;  %v3123_v47 = vld [vmem:[%s4720_s11] sm:$0x3]  ;;  %s3909_s11 = scalar_lea.vmem %s3228_s15, 512 }
 0x4e2   :  { %3199 = vmatprep.subr.mxu1 %v3112_v6  ;;  %v3132_v6 = vrot.slane %v3123_v47, %v4119_v44  ;;  %p3910_p7 = scmp.ne.s32.totalorder %s3228_s15, %s3909_s11  ;;  %p3915_p9 = scmp.lt.s32.totalorder %s3909_s11, %s3909_s11 }
 0x4e3   :  { %3200 = vmatpush2.msra.mxu1 %v3111_v10 }
 0x4e4   :  { %3201 = vmatprep.subr.mxu1 %v3110_v35  ;;  %p3916_p10 = por %p3915_p9, %p3914_p8 }
 0x4e5   :  { %3202 = vmatpush2.msra.mxu1 %v3109_v37 }
 0x4e6   :  { %3203 = vmatprep.subr.mxu1 %v3108_v63  ;;  %p3917_p11 = pnand %p3916_p10, %p3910_p7 }
 0x4e7   :  { %3204 = vmatpush2.msra.mxu1 %v3107_v53 }
 0x50f   :  { %v4651_v55 = vpop.f32.mrf.mxu0 }
 0x511   :  { %v4653_v15 = vpop.f32.mrf.mxu0 }
 0x554   :  { %v3553_v1 = vpop.f32.mrf.mxu0 }
 0x556   :  { %v2152_v2 = vpop.f32.mrf.mxu0 }
 0x557   :  { %v3643_v58 = vpack.i.bf16 %v3553_v1, %v2152_v2 }
 0x558   :  { %v3560_v45 = vpop.f32.mrf.mxu1 }
 0x559   :  { %3644 = vrot.lane.b32.xlu0 %v3643_v58, %s3944_s14 }
 0x55a   :  { %v2233_v59 = vpop.f32.mrf.mxu1 }
 0x55b   :  { %v3648_v46 = vpack.i.bf16 %v3560_v45, %v2233_v59 }
 0x55c   :  { %v3567_v41 = vpop.f32.mrf.mxu0 }
 0x55d   :  { %3649 = vrot.lane.b32.xlu1 %v3648_v46, %s3956_s7 }
 0x55e   :  { %v2314_v16 = vpop.f32.mrf.mxu0 }
 0x55f   :  { %v3653_v17 = vpack.i.bf16 %v3567_v41, %v2314_v16 }
 0x560   :  { %v3574_v12 = vpop.f32.mrf.mxu1 }
 0x561   :  { %3654 = vrot.lane.b32.xlu0 %v3653_v17, %s3955_s5 }
 0x562   :  { %v2395_v19 = vpop.f32.mrf.mxu1 }
 0x563   :  { %v3658_v3 = vpack.i.bf16 %v3574_v12, %v2395_v19 }
 0x564   :  { %v3581_v34 = vpop.f32.mrf.mxu0 }
 0x565   :  { %3659 = vrot.lane.b32.xlu1 %v3658_v3, %s3953_s4 }
 0x566   :  { %v2476_v62 = vpop.f32.mrf.mxu0 }
 0x567   :  { %v3663_v30 = vpack.i.bf16 %v3581_v34, %v2476_v62 }
 0x568   :  { %v3588_v23 = vpop.f32.mrf.mxu1 }
 0x569   :  { %3664 = vrot.lane.b32.xlu1 %v3663_v30, %s3954_s23 }
 0x56a   :  { %v2557_v5 = vpop.f32.mrf.mxu1 }
 0x56b   :  { %v3668_v4 = vpack.i.bf16 %v3588_v23, %v2557_v5 }
 0x56c   :  { %v3595_v33 = vpop.f32.mrf.mxu0 }
 0x56d   :  { %3669 = vrot.lane.b32.xlu1 %v3668_v4, %s3951_s21 }
 0x56e   :  { %v2638_v54 = vpop.f32.mrf.mxu0 }
 0x570   :  { %v4662_v49 = vpop.f32.mrf.mxu1 }
 0x571   :  { %3021 = vrot.lane.b32.xlu1 %v2638_v54, %s3952_s22  ;;  %v3128_v54 = vrot.slane %v3123_v47, %v4082_v28 }
 0x572   :  { %v2719_v18 = vpop.f32.mrf.mxu1 }
 0x574   :  { %v3609_v21 = vpop.f32.mrf.mxu0 }
 0x575   :  { %3031 = vrot.lane.b32.xlu0 %v3609_v21, %s3944_s14 }
 0x576   :  { %v2800_v0 = vpop.f32.mrf.mxu0 }
 0x578   :  { %v3616_v14 = vpop.f32.mrf.mxu1 }
 0x579   :  { %3029 = vrot.lane.b32.xlu0 %v2800_v0, %s3944_s14  ;;  %3039 = vrot.lane.b32.xlu1 %v3616_v14, %s3956_s7 }
 0x57a   :  { %v2881_v22 = vpop.f32.mrf.mxu1 }
 0x57c   :  { %v3623_v1 = vpop.f32.mrf.mxu0 }
 0x57d   :  { %3023 = vrot.lane.b32.xlu1 %v3595_v33, %s3952_s22  ;;  %3037 = vrot.lane.b32.xlu0 %v2881_v22, %s3956_s7 }
 0x57e   :  { %v2962_v40 = vpop.f32.mrf.mxu0 }
 0x581   :  { %3045 = vrot.lane.b32.xlu0 %v2962_v40, %s3955_s5 }
 0x585   :  { %3047 = vrot.lane.b32.xlu0 %v3623_v1, %s3955_s5 }
 0x5cb   :  { %v3645_v2 = vpop.permute.xlu0 %3644 }
 0x5cc   :  { %v3646_v26 = vunpack.i.l.bf16 %v3645_v2  ;;  %v3647_v17 = vunpack.i.h.bf16 %v3645_v2 }
 0x5ce   :  { %v3051_v32 = vsel %vm738_vm2, %v4653_v15, %v3646_v26  ;;  %v3052_v20 = vsel %vm738_vm2, %v4651_v55, %v3647_v17 }
 0x5cf   :  { %v3650_v8 = vpop.permute.xlu1 %3649 }
 0x5d0   :  { %v3651_v27 = vunpack.i.l.bf16 %v3650_v8  ;;  %v3652_v36 = vunpack.i.h.bf16 %v3650_v8 }
 0x5d2   :  { %v3054_v16 = vsel %vm3053_vm3, %v3051_v32, %v3651_v27  ;;  %v3055_v23 = vsel %vm3053_vm3, %v3052_v20, %v3652_v36 }
 0x5d3   :  { %v3655_v57 = vpop.permute.xlu0 %3654 }
 0x5d4   :  { %v3656_v59 = vunpack.i.l.bf16 %v3655_v57  ;;  %v3657_v19 = vunpack.i.h.bf16 %v3655_v57 }
 0x5d6   :  { %v3057_v52 = vsel %vm3056_vm4, %v3054_v16, %v3656_v59  ;;  %v3058_v39 = vsel %vm3056_vm4, %v3055_v23, %v3657_v19 }
 0x5d7   :  { %v3660_v51 = vpop.permute.xlu1 %3659 }
 0x5d8   :  { %v3661_v13 = vunpack.i.l.bf16 %v3660_v51  ;;  %v3662_v7 = vunpack.i.h.bf16 %v3660_v51 }
 0x5da   :  { %v3060_v48 = vsel %vm3059_vm5, %v3057_v52, %v3661_v13  ;;  %v3061_v55 = vsel %vm3059_vm5, %v3058_v39, %v3662_v7 }
 0x5db   :  { %v3665_v58 = vpop.permute.xlu1 %3664 }
 0x5dc   :  { %v3666_v60 = vunpack.i.l.bf16 %v3665_v58  ;;  %v3667_v61 = vunpack.i.h.bf16 %v3665_v58 }
 0x5de   :  { %v3062_v3 = vsel %vm156_vm0, %v3060_v48, %v3666_v60  ;;  %v3063_v33 = vsel %vm156_vm0, %v3061_v55, %v3667_v61 }
 0x5df   :  { %v3670_v45 = vpop.permute.xlu1 %3669 }
 0x5e0   :  { %v3671_v56 = vunpack.i.l.bf16 %v3670_v45  ;;  %v3672_v62 = vunpack.i.h.bf16 %v3670_v45 }
 0x5e2   :  { %v3064_v15 = vsel %vm274_vm1, %v3062_v3, %v3671_v56  ;;  %v3065_v50 = vsel %vm274_vm1, %v3063_v33, %v3672_v62 }
 0x5e3   :  { %v3022_v41 = vpop.permute.xlu1 %3021 }
 0x5e4   :  { %v3067_v9 = vsel %vm3066_vm6, %v3064_v15, %v3022_v41 }
 0x5e7   :  { %v3032_v24 = vpop.permute.xlu0 %3031 }
 0x5e8   :  { %v3070_v25 = vsel %vm738_vm2, %v4662_v49, %v3032_v24 }
 0x5eb   :  { %v3030_v46 = vpop.permute.xlu0 %3029  ;;  %v3040_v38 = vpop.permute.xlu1 %3039 }
 0x5ec   :  { %v3069_v34 = vsel %vm738_vm2, %v2719_v18, %v3030_v46  ;;  %v3072_v5 = vsel %vm3053_vm3, %v3070_v25, %v3040_v38 }
 0x5ef   :  { %v3038_v12 = vpop.permute.xlu0 %3037  ;;  %v3024_v11 = vpop.permute.xlu1 %3023 }
 0x5f0   :  { %v3071_v31 = vsel %vm3053_vm3, %v3069_v34, %v3038_v12  ;;  %v3068_v42 = vsel %vm3066_vm6, %v3065_v50, %v3024_v11 }
 0x5f3   :  { %v3046_v29 = vpop.permute.xlu0 %3045 }
 0x5f4   :  { %v3073_v30 = vsel %vm3056_vm4, %v3071_v31, %v3046_v29 }
 0x5f5   :  { %3323 = vmatprep.mubr.msk.f32.mxu1 %vm3059_vm5, %v3073_v30 }
 0x5f6   :  { %3206 = vmatmul.mubr.f32.vlgmr.msra.gmra.mxu1 %v3067_v9 }
 0x5f7   :  { %v3048_v4 = vpop.permute.xlu0 %3047 }
 0x5f8   :  { %v3074_v43 = vsel %vm3056_vm4, %v3072_v5, %v3048_v4 }
 0x5f9   :  { %3324 = vmatprep.mubr.msk.f32.mxu1 %vm3059_vm5, %v3074_v43 }
 0x5fa   :  { %3212 = vmatmul.mubr.f32.gmra.mxu1 %v3068_v42 }
 0x6b6   :  { %v3207_v10 = vpop.f32.mrf.mxu1 }
 0x6b7   :  { %v3208_v35 = vadd.f32 %v3207_v10, %v3128_v54 }
 0x6b8   :  { %v3209_v37 = vpop.f32.mrf.mxu1 }
 0x6b9   :  { %3218 = vst [vmem:[#allocation14] sm:$0xff] %v3208_v35  ;;  %v3210_v49 = vadd.f32 %v3209_v37, %v3132_v6 }
 0x6ba   :  { %v3213_v21 = vpop.f32.mrf.mxu1 }
 0x6bb   :  { %3219 = vst.msk [vmem:[#allocation14 + $0x8] sm:$0xff] %vm3059_vm5, %v3210_v49  ;;  %v3214_v63 = vadd.f32 %v3213_v21, %v3128_v54 }
 0x6bc   :  { %v3215_v53 = vpop.f32.mrf.mxu1 }
 0x6bd   :  { %3220 = vst [vmem:[#allocation14 + $0x10] sm:$0xff] %v3214_v63  ;;  %v3216_v18 = vadd.f32 %v3215_v53, %v3132_v6 }
 0x6bf   :  { %3221 = vst.msk [vmem:[#allocation14 + $0x18] sm:$0xff] %vm3059_vm5, %v3216_v18 }
 0x6c0   :  { %3920 = shalt.err (!%p3917_p11)
}
 0x6c1   :  { %3233 = dma.vmem_to_hbm [thread:$0]  %s3228_s15, 512, %s4721_s12, [#allocation4], %s3943_s13, %s3943_s13, %s3944_s14  }
 0x6c2   :  { %3937 = dma.done.wait [#allocation4], 512  }
 0x6c3   :  { %3938 = vsyncadd [#allocation4], 4294966784 }
 0x6c4   :  { %3237 = vsyncpa [#allocation3], 1 }
 0x6c5   :  { %3238 = vsyncpa [#allocation6], 1 }
 0x6c6   :  { %3239 = vsyncpa [#allocation9], 1 }
 0x6c7   :  { %3240 = vsyncpa [#allocation12], 1 }
 0x6c8   :  { %3241 = vsyncpa [#allocation4], 1 }

</bundles_post_ra>
